<compile_context>
chip_gen: v6e
topology: v6e:2x2x1
jax: 0.10.0
libtpu: 0.0.40
codegen_flags: <defaults>
</compile_context>

<pallas_src>
import jax
import jax.numpy as jnp
from jax.experimental import pallas as pl
from jax.experimental.pallas import tpu as pltpu


# -----------------------------------------------------------------------------
# Kernel 1: conv1 (KxK SAME) + bias + ReLU + residual, then conv2 (KxK SAME) + bias.
# One (batch, H-tile) block per grid step; all tensors lane-dense (rows, W*C).
# -----------------------------------------------------------------------------
def _conv_block_kernel(xt_ref, bw1_ref, b1_ref, bw2_ref, b2_ref, res2_ref):
    TH, WC = res2_ref.shape
    TH4 = xt_ref.shape[0]
    p = (TH4 - TH) // 4            # conv half-width (halo rows per side per conv)
    K = 2 * p + 1
    THE = TH + 2 * p               # conv1 output rows (extended by conv2's halo)
    cdt = bw1_ref.dtype            # MXU compute dtype (f32 or bf16)

    xt = xt_ref[...]               # (TH + 4p, W*C) f32, lane-dense
    xt_c = xt.astype(cdt)

    # ---- conv1 on the extended row range [t*TH - p, t*TH + TH + p) -----------
    acc1 = jnp.dot(xt_c[0:THE, :], bw1_ref[0], preferred_element_type=jnp.float32)
    for dh in range(1, K):
        acc1 += jnp.dot(xt_c[dh:dh + THE, :], bw1_ref[dh],
                        preferred_element_type=jnp.float32)
    # ReLU + residual, both in the lane-dense domain (no reshapes).
    res1 = jnp.maximum(acc1 + b1_ref[...], 0.0) + xt[p:p + THE, :]

    # Rows outside the image must be exactly zero (conv2's SAME zero padding).
    t = pl.program_id(1)
    h_img = TH * pl.num_programs(1)
    grow = t * TH - p + jax.lax.broadcasted_iota(jnp.int32, (THE, WC), 0)
    res1 = jnp.where((grow >= 0) & (grow < h_img), res1, 0.0)

    # ---- conv2 ---------------------------------------------------------------
    res1_c = res1.astype(cdt)
    acc2 = jnp.dot(res1_c[0:TH, :], bw2_ref[0], preferred_element_type=jnp.float32)
    for dh in range(1, K):
        acc2 += jnp.dot(res1_c[dh:dh + TH, :], bw2_ref[dh],
                        preferred_element_type=jnp.float32)
    res2_ref[...] = (acc2 + b2_ref[...]).astype(res2_ref.dtype)


# -----------------------------------------------------------------------------
# Kernel 2: channel-attention gate (precomputed, lane-tiled) * pixel attention
# (block-diagonal lane-dense 1x1 matmuls) + final residual.
# -----------------------------------------------------------------------------
def _attention_kernel(res2_ref, x_ref, ca_ref, paw1_ref, pab1_ref, paw2_ref,
                      pab2_ref, out_ref):
    res3 = res2_ref[...] * ca_ref[...]                       # CALayer multiply
    hid = jnp.dot(res3, paw1_ref[...], preferred_element_type=jnp.float32)
    hid = jnp.maximum(hid + pab1_ref[...], 0.0)              # (TH, W*C8)
    pa = jnp.dot(hid, paw2_ref[...], preferred_element_type=jnp.float32)
    pa = jax.nn.sigmoid(pa + pab2_ref[...])                  # (TH, W*C) gate
    out_ref[...] = (res3 * pa + x_ref[...]).astype(out_ref.dtype)


# -----------------------------------------------------------------------------
# Wrapper-side weight preparation.
# -----------------------------------------------------------------------------
def _band_conv_weight(w_hwio, W, C, p):
    """(K,K,C,C) HWIO -> (K, W*C, W*C) banded block weight (SAME boundary in W)."""
    K = w_hwio.shape[0]
    WC = W * C
    bw = jnp.zeros((K, WC, WC), w_hwio.dtype)
    for dh in range(K):
        for dw in range(K):
            s = dw - p
            lo, hi = max(0, -s), min(W, W - s)
            if lo >= hi:
                continue
            n = hi - lo
            blk = jnp.kron(jnp.eye(n, dtype=w_hwio.dtype), w_hwio[dh, dw])
            bw = bw.at[dh,
                       (lo + s) * C:(lo + s + n) * C,
                       lo * C:(lo + n) * C].add(blk)
    return bw


def feature_fusion(x_nhwc, params, *, tile_h=None, compute_dtype=jnp.float32):
    """x_nhwc: (N, H, W, C) float32. Returns (N, H, W, C)."""
    N, H, W, C = x_nhwc.shape
    K = params["w1"].shape[0]
    p = K // 2
    C8 = params["caw1"].shape[1]
    WC, WC8 = W * C, W * C8
    assert WC % 128 == 0, "W*C must be a multiple of 128 for lane-dense tiles"

    if tile_h is None:
        cand = [th for th in range(8, min(H, 64) + 1, 8) if H % th == 0]
        tile_h = max(cand) if cand else H
    TH = tile_h
    assert H % TH == 0 and (TH % 8 == 0 or TH == H)
    nH = H // TH
    halo = 2 * p                                   # input halo rows per side

    x_flat = x_nhwc.reshape(N, H, WC)
    xp = jnp.pad(x_flat, ((0, 0), (halo, halo), (0, 0)))
    # Overlapping haloed row tiles (recompute halo for conv1 feeding conv2).
    xtiles = jnp.stack(
        [xp[:, t * TH:t * TH + TH + 2 * halo, :] for t in range(nH)], axis=1)

    bw1 = _band_conv_weight(params["w1"], W, C, p).astype(compute_dtype)
    bw2 = _band_conv_weight(params["w2"], W, C, p).astype(compute_dtype)
    b1_lane = jnp.tile(params["b1"].reshape(1, C), (1, W)).astype(jnp.float32)
    b2_lane = jnp.tile(params["b2"].reshape(1, C), (1, W)).astype(jnp.float32)

    grid = (N, nH)
    cparams = pltpu.CompilerParams(dimension_semantics=("parallel", "parallel"))

    # ---- kernel 1: the two convolutions + first residual ---------------------
    res2 = pl.pallas_call(
        _conv_block_kernel,
        out_shape=jax.ShapeDtypeStruct((N, H, WC), jnp.float32),
        grid_spec=pltpu.PrefetchScalarGridSpec(
            num_scalar_prefetch=0,
            grid=grid,
            in_specs=[
                pl.BlockSpec((None, None, TH + 4 * p, WC),
                             lambda n, t: (n, t, 0, 0)),
                pl.BlockSpec((K, WC, WC), lambda n, t: (0, 0, 0)),
                pl.BlockSpec((1, WC), lambda n, t: (0, 0)),
                pl.BlockSpec((K, WC, WC), lambda n, t: (0, 0, 0)),
                pl.BlockSpec((1, WC), lambda n, t: (0, 0)),
            ],
            out_specs=pl.BlockSpec((None, TH, WC), lambda n, t: (n, t, 0)),
        ),
        compiler_params=cparams,
    )(xtiles, bw1, b1_lane, bw2, b2_lane)

    # ---- CALayer gate (global average pool couples every spatial tile) -------
    gap = res2.reshape(N, H, W, C).mean(axis=(1, 2))                 # (N, C)
    hid = jax.nn.relu(gap @ params["caw1"] + params["cab1"])         # (N, C8)
    gate = jax.nn.sigmoid(hid @ params["caw2"] + params["cab2"])     # (N, C)
    ca_lane = jnp.tile(gate, (1, W)).reshape(N, 1, WC)               # lane-dense

    # ---- PALayer 1x1 convs as block-diagonal lane-dense matmuls --------------
    eye_w = jnp.eye(W, dtype=jnp.float32)
    paw1_blk = jnp.kron(eye_w, params["paw1"])                       # (W*C, W*C8)
    pab1_lane = jnp.tile(params["pab1"], (1, W))                     # (1, W*C8)
    paw2_exp = jnp.kron(eye_w, jnp.tile(params["paw2"], (1, C)))     # (W*C8, W*C)
    pab2 = params["pab2"].reshape(1, 1).astype(jnp.float32)

    # ---- kernel 2: channel gate * pixel attention + final residual ----------
    out = pl.pallas_call(
        _attention_kernel,
        out_shape=jax.ShapeDtypeStruct((N, H, WC), x_nhwc.dtype),
        grid_spec=pltpu.PrefetchScalarGridSpec(
            num_scalar_prefetch=0,
            grid=grid,
            in_specs=[
                pl.BlockSpec((None, TH, WC), lambda n, t: (n, t, 0)),
                pl.BlockSpec((None, TH, WC), lambda n, t: (n, t, 0)),
                pl.BlockSpec((None, 1, WC), lambda n, t: (n, 0, 0)),
                pl.BlockSpec((WC, WC8), lambda n, t: (0, 0)),
                pl.BlockSpec((1, WC8), lambda n, t: (0, 0)),
                pl.BlockSpec((WC8, WC), lambda n, t: (0, 0)),
                pl.BlockSpec((1, 1), lambda n, t: (0, 0)),
            ],
            out_specs=pl.BlockSpec((None, TH, WC), lambda n, t: (n, t, 0)),
        ),
        compiler_params=cparams,
    )(res2, x_flat, ca_lane, paw1_blk, pab1_lane, paw2_exp, pab2)

    return out.reshape(N, H, W, C)


def feature_fusion_ref(x, params):
    """Pure-JAX reference (NHWC) mirroring the PyTorch forward."""
    def conv(z, w, b):
        out = jax.lax.conv_general_dilated(
            z, w, (1, 1), "SAME",
            dimension_numbers=("NHWC", "HWIO", "NHWC"))
        return out + b.reshape(1, 1, 1, -1)

    res = jax.nn.relu(conv(x, params["w1"], params["b1"])) + x
    res = conv(res, params["w2"], params["b2"])
    # CALayer
    y = jnp.mean(res, axis=(1, 2), keepdims=True)
    y = jax.nn.relu(jnp.einsum("nhwc,cd->nhwd", y, params["caw1"]) + params["cab1"])
    y = jax.nn.sigmoid(jnp.einsum("nhwd,dc->nhwc", y, params["caw2"]) + params["cab2"])
    res = res * y
    # PALayer
    q = jax.nn.relu(jnp.einsum("nhwc,cd->nhwd", res, params["paw1"]) + params["pab1"])
    q = jax.nn.sigmoid(jnp.einsum("nhwd,de->nhwe", q, params["paw2"]) + params["pab2"])
    res = res * q
    return res + x


if __name__ == "__main__":
    key = jax.random.PRNGKey(0)
    N, C, H, W, K = 2, 16, 16, 16, 3        # dim=16 -> dim//8 = 2
    C8 = C // 8
    keys = jax.random.split(key, 13)
    s = 0.1
    params = {
        "w1":   jax.random.normal(keys[0],  (K, K, C, C), jnp.float32) * s,
        "b1":   jax.random.normal(keys[1],  (1, C),       jnp.float32) * s,
        "w2":   jax.random.normal(keys[2],  (K, K, C, C), jnp.float32) * s,
        "b2":   jax.random.normal(keys[3],  (1, C),       jnp.float32) * s,
        "caw1": jax.random.normal(keys[4],  (C, C8),      jnp.float32) * s,
        "cab1": jax.random.normal(keys[5],  (1, C8),      jnp.float32) * s,
        "caw2": jax.random.normal(keys[6],  (C8, C),      jnp.float32) * s,
        "cab2": jax.random.normal(keys[7],  (1, C),       jnp.float32) * s,
        "paw1": jax.random.normal(keys[8],  (C, C8),      jnp.float32) * s,
        "pab1": jax.random.normal(keys[9],  (1, C8),      jnp.float32) * s,
        "paw2": jax.random.normal(keys[10], (C8, 1),      jnp.float32) * s,
        "pab2": jax.random.normal(keys[11], (1, 1),       jnp.float32) * s,
    }

    x_nchw = jax.random.normal(keys[12], (N, C, H, W), jnp.float32)  # PyTorch layout
    x_nhwc = jnp.transpose(x_nchw, (0, 2, 3, 1))                     # kernel layout

    ref = feature_fusion_ref(x_nhwc, params)

    # f32 path, H-tiled (exercises the recompute halo + boundary masking).
    out_f32 = jax.block_until_ready(feature_fusion(x_nhwc, params, tile_h=8))
    assert out_f32.shape == (N, H, W, C)
    assert jnp.allclose(out_f32, ref, atol=2e-3, rtol=2e-3), \
        float(jnp.max(jnp.abs(out_f32 - ref)))

    # Single-tile path (tile_h == H).
    out_one = jax.block_until_ready(feature_fusion(x_nhwc, params, tile_h=H))
    assert jnp.allclose(out_one, ref, atol=2e-3, rtol=2e-3), \
        float(jnp.max(jnp.abs(out_one - ref)))

    # bf16 conv-weight MXU path (recommended on v5e/v6e/v7x), f32 accumulation.
    out_bf16 = jax.block_until_ready(
        feature_fusion(x_nhwc, params, tile_h=8, compute_dtype=jnp.bfloat16))
    assert jnp.allclose(out_bf16, ref, atol=1e-1, rtol=1e-1), \
        float(jnp.max(jnp.abs(out_bf16 - ref)))

    print("KERNEL_OK")
</pallas_src>

<mosaic_0001>
module attributes {stable_mosaic.version = 11 : i64} {
  func.func @_conv_block_kernel(%arg0: i32, %arg1: i32, %arg2: memref<1x1x12x256xf32, #tpu.memory_space<vmem>>, %arg3: memref<3x256x256xf32, #tpu.memory_space<vmem>>, %arg4: memref<1x256xf32, #tpu.memory_space<vmem>>, %arg5: memref<3x256x256xf32, #tpu.memory_space<vmem>>, %arg6: memref<1x256xf32, #tpu.memory_space<vmem>>, %arg7: memref<1x8x256xf32, #tpu.memory_space<vmem>>) attributes {dimension_semantics = [#tpu.dimension_semantics<parallel>, #tpu.dimension_semantics<parallel>], iteration_bounds = array<i64: 2, 2>, scalar_prefetch = 0 : i64, scratch_operands = 0 : i64, tpu.core_type = #tpu.core_type<tc>, window_params = [{transform_indices = @transform_0, window_bounds = array<i64: 1, 1, 12, 256>}, {pipeline_mode = #tpu.pipeline_mode<synchronous>, transform_indices = @transform_1, window_bounds = array<i64: 3, 256, 256>}, {pipeline_mode = #tpu.pipeline_mode<synchronous>, transform_indices = @transform_2, window_bounds = array<i64: 1, 256>}, {pipeline_mode = #tpu.pipeline_mode<synchronous>, transform_indices = @transform_3, window_bounds = array<i64: 3, 256, 256>}, {pipeline_mode = #tpu.pipeline_mode<synchronous>, transform_indices = @transform_4, window_bounds = array<i64: 1, 256>}, {transform_indices = @transform_5, window_bounds = array<i64: 1, 8, 256>}]} {
    %c0 = arith.constant 0 : index
    %c0_0 = arith.constant 0 : index
    %c0_1 = arith.constant 0 : index
    %c0_2 = arith.constant 0 : index
    %0 = vector.load %arg2[%c0, %c0_0, %c0_1, %c0_2] : memref<1x1x12x256xf32, #tpu.memory_space<vmem>>, vector<1x1x12x256xf32>
    %1 = vector.shape_cast %0 : vector<1x1x12x256xf32> to vector<12x256xf32>
    %2 = vector.extract_strided_slice %1 {offsets = [0, 0], sizes = [10, 256], strides = [1, 1]} : vector<12x256xf32> to vector<10x256xf32>
    %c0_3 = arith.constant 0 : index
    %c0_4 = arith.constant 0 : index
    %c0_5 = arith.constant 0 : index
    %3 = vector.load %arg3[%c0_3, %c0_4, %c0_5] : memref<3x256x256xf32, #tpu.memory_space<vmem>>, vector<1x256x256xf32>
    %4 = vector.shape_cast %3 : vector<1x256x256xf32> to vector<256x256xf32>
    %cst = arith.constant dense<0.000000e+00> : vector<10x256xf32>
    %5 = tpu.matmul %2, %4, %cst {dimension_numbers = #tpu.dot_dimension_numbers<[1], [0], [0], [1], [0, 0, 1, 1], [], []>} : vector<10x256xf32>, vector<256x256xf32>, vector<10x256xf32> -> vector<10x256xf32>
    %6 = vector.extract_strided_slice %1 {offsets = [1, 0], sizes = [10, 256], strides = [1, 1]} : vector<12x256xf32> to vector<10x256xf32>
    %c1 = arith.constant 1 : index
    %c0_6 = arith.constant 0 : index
    %c0_7 = arith.constant 0 : index
    %7 = vector.load %arg3[%c1, %c0_6, %c0_7] : memref<3x256x256xf32, #tpu.memory_space<vmem>>, vector<1x256x256xf32>
    %8 = vector.shape_cast %7 : vector<1x256x256xf32> to vector<256x256xf32>
    %cst_8 = arith.constant dense<0.000000e+00> : vector<10x256xf32>
    %9 = tpu.matmul %6, %8, %cst_8 {dimension_numbers = #tpu.dot_dimension_numbers<[1], [0], [0], [1], [0, 0, 1, 1], [], []>} : vector<10x256xf32>, vector<256x256xf32>, vector<10x256xf32> -> vector<10x256xf32>
    %10 = arith.addf %5, %9 : vector<10x256xf32>
    %11 = vector.extract_strided_slice %1 {offsets = [2, 0], sizes = [10, 256], strides = [1, 1]} : vector<12x256xf32> to vector<10x256xf32>
    %c2 = arith.constant 2 : index
    %c0_9 = arith.constant 0 : index
    %c0_10 = arith.constant 0 : index
    %12 = vector.load %arg3[%c2, %c0_9, %c0_10] : memref<3x256x256xf32, #tpu.memory_space<vmem>>, vector<1x256x256xf32>
    %13 = vector.shape_cast %12 : vector<1x256x256xf32> to vector<256x256xf32>
    %cst_11 = arith.constant dense<0.000000e+00> : vector<10x256xf32>
    %14 = tpu.matmul %11, %13, %cst_11 {dimension_numbers = #tpu.dot_dimension_numbers<[1], [0], [0], [1], [0, 0, 1, 1], [], []>} : vector<10x256xf32>, vector<256x256xf32>, vector<10x256xf32> -> vector<10x256xf32>
    %15 = arith.addf %10, %14 : vector<10x256xf32>
    %c0_12 = arith.constant 0 : index
    %c0_13 = arith.constant 0 : index
    %16 = vector.load %arg4[%c0_12, %c0_13] : memref<1x256xf32, #tpu.memory_space<vmem>>, vector<1x256xf32>
    %17 = vector.broadcast %16 : vector<1x256xf32> to vector<10x256xf32>
    %18 = arith.addf %15, %17 : vector<10x256xf32>
    %cst_14 = arith.constant 0.000000e+00 : f32
    %19 = vector.broadcast %cst_14 : f32 to vector<10x256xf32>
    %20 = arith.maximumf %18, %19 : vector<10x256xf32>
    %21 = vector.extract_strided_slice %1 {offsets = [1, 0], sizes = [10, 256], strides = [1, 1]} : vector<12x256xf32> to vector<10x256xf32>
    %22 = arith.addf %20, %21 : vector<10x256xf32>
    %c8_i32 = arith.constant 8 : i32
    %23 = arith.muli %arg1, %c8_i32 : i32
    %c1_i32 = arith.constant 1 : i32
    %24 = arith.subi %23, %c1_i32 : i32
    %25 = tpu.iota {dimensions = array<i32: 0>} : vector<10x256xi32>
    %26 = vector.broadcast %24 : i32 to vector<10x256xi32>
    %27 = arith.addi %26, %25 : vector<10x256xi32>
    %c0_i32 = arith.constant 0 : i32
    %28 = vector.broadcast %c0_i32 : i32 to vector<10x256xi32>
    %29 = arith.cmpi sge, %27, %28 : vector<10x256xi32>
    %c16_i32 = arith.constant 16 : i32
    %30 = vector.broadcast %c16_i32 : i32 to vector<10x256xi32>
    %31 = arith.cmpi slt, %27, %30 : vector<10x256xi32>
    %32 = arith.andi %29, %31 : vector<10x256xi1>
    %cst_15 = arith.constant 0.000000e+00 : f32
    %33 = vector.broadcast %cst_15 : f32 to vector<10x256xf32>
    %34 = arith.select %32, %22, %33 : vector<10x256xi1>, vector<10x256xf32>
    %35 = vector.extract_strided_slice %34 {offsets = [0, 0], sizes = [8, 256], strides = [1, 1]} : vector<10x256xf32> to vector<8x256xf32>
    %c0_16 = arith.constant 0 : index
    %c0_17 = arith.constant 0 : index
    %c0_18 = arith.constant 0 : index
    %36 = vector.load %arg5[%c0_16, %c0_17, %c0_18] : memref<3x256x256xf32, #tpu.memory_space<vmem>>, vector<1x256x256xf32>
    %37 = vector.shape_cast %36 : vector<1x256x256xf32> to vector<256x256xf32>
    %cst_19 = arith.constant dense<0.000000e+00> : vector<8x256xf32>
    %38 = tpu.matmul %35, %37, %cst_19 {dimension_numbers = #tpu.dot_dimension_numbers<[1], [0], [0], [1], [0, 0, 1, 1], [], []>} : vector<8x256xf32>, vector<256x256xf32>, vector<8x256xf32> -> vector<8x256xf32>
    %39 = vector.extract_strided_slice %34 {offsets = [1, 0], sizes = [8, 256], strides = [1, 1]} : vector<10x256xf32> to vector<8x256xf32>
    %c1_20 = arith.constant 1 : index
    %c0_21 = arith.constant 0 : index
    %c0_22 = arith.constant 0 : index
    %40 = vector.load %arg5[%c1_20, %c0_21, %c0_22] : memref<3x256x256xf32, #tpu.memory_space<vmem>>, vector<1x256x256xf32>
    %41 = vector.shape_cast %40 : vector<1x256x256xf32> to vector<256x256xf32>
    %cst_23 = arith.constant dense<0.000000e+00> : vector<8x256xf32>
    %42 = tpu.matmul %39, %41, %cst_23 {dimension_numbers = #tpu.dot_dimension_numbers<[1], [0], [0], [1], [0, 0, 1, 1], [], []>} : vector<8x256xf32>, vector<256x256xf32>, vector<8x256xf32> -> vector<8x256xf32>
    %43 = arith.addf %38, %42 : vector<8x256xf32>
    %44 = vector.extract_strided_slice %34 {offsets = [2, 0], sizes = [8, 256], strides = [1, 1]} : vector<10x256xf32> to vector<8x256xf32>
    %c2_24 = arith.constant 2 : index
    %c0_25 = arith.constant 0 : index
    %c0_26 = arith.constant 0 : index
    %45 = vector.load %arg5[%c2_24, %c0_25, %c0_26] : memref<3x256x256xf32, #tpu.memory_space<vmem>>, vector<1x256x256xf32>
    %46 = vector.shape_cast %45 : vector<1x256x256xf32> to vector<256x256xf32>
    %cst_27 = arith.constant dense<0.000000e+00> : vector<8x256xf32>
    %47 = tpu.matmul %44, %46, %cst_27 {dimension_numbers = #tpu.dot_dimension_numbers<[1], [0], [0], [1], [0, 0, 1, 1], [], []>} : vector<8x256xf32>, vector<256x256xf32>, vector<8x256xf32> -> vector<8x256xf32>
    %48 = arith.addf %43, %47 : vector<8x256xf32>
    %c0_28 = arith.constant 0 : index
    %c0_29 = arith.constant 0 : index
    %49 = vector.load %arg6[%c0_28, %c0_29] : memref<1x256xf32, #tpu.memory_space<vmem>>, vector<1x256xf32>
    %50 = vector.broadcast %49 : vector<1x256xf32> to vector<8x256xf32>
    %51 = arith.addf %48, %50 : vector<8x256xf32>
    %c0_30 = arith.constant 0 : index
    %c0_31 = arith.constant 0 : index
    %c0_32 = arith.constant 0 : index
    %52 = vector.load %arg7[%c0_30, %c0_31, %c0_32] : memref<1x8x256xf32, #tpu.memory_space<vmem>>, vector<1x8x256xf32>
    %53 = vector.shape_cast %52 : vector<1x8x256xf32> to vector<8x256xf32>
    %54 = vector.shape_cast %51 : vector<8x256xf32> to vector<1x8x256xf32>
    tpu.vector_store %arg7[%c0_30, %c0_31, %c0_32], %54 {strides = array<i32>} : memref<1x8x256xf32, #tpu.memory_space<vmem>>, vector<1x8x256xf32>,
    return
  }
  func.func @transform_0(%arg0: i32, %arg1: i32) -> (i32, i32, i32, i32) {
    %c0_i32 = arith.constant 0 : i32
    %c0_i32_0 = arith.constant 0 : i32
    %c0_i32_1 = arith.constant 0 : i32
    return %arg0, %arg1, %c0_i32, %c0_i32_0 : i32, i32, i32, i32
  }
  func.func @transform_1(%arg0: i32, %arg1: i32) -> (i32, i32, i32) {
    %c0_i32 = arith.constant 0 : i32
    %c0_i32_0 = arith.constant 0 : i32
    %c0_i32_1 = arith.constant 0 : i32
    %c0_i32_2 = arith.constant 0 : i32
    return %c0_i32, %c0_i32_0, %c0_i32_1 : i32, i32, i32
  }
  func.func @transform_2(%arg0: i32, %arg1: i32) -> (i32, i32) {
    %c0_i32 = arith.constant 0 : i32
    %c0_i32_0 = arith.constant 0 : i32
    %c0_i32_1 = arith.constant 0 : i32
    return %c0_i32, %c0_i32_0 : i32, i32
  }
  func.func @transform_3(%arg0: i32, %arg1: i32) -> (i32, i32, i32) {
    %c0_i32 = arith.constant 0 : i32
    %c0_i32_0 = arith.constant 0 : i32
    %c0_i32_1 = arith.constant 0 : i32
    %c0_i32_2 = arith.constant 0 : i32
    return %c0_i32, %c0_i32_0, %c0_i32_1 : i32, i32, i32
  }
  func.func @transform_4(%arg0: i32, %arg1: i32) -> (i32, i32) {
    %c0_i32 = arith.constant 0 : i32
    %c0_i32_0 = arith.constant 0 : i32
    %c0_i32_1 = arith.constant 0 : i32
    return %c0_i32, %c0_i32_0 : i32, i32
  }
  func.func @transform_5(%arg0: i32, %arg1: i32) -> (i32, i32, i32) {
    %c0_i32 = arith.constant 0 : i32
    %c0_i32_0 = arith.constant 0 : i32
    return %arg0, %arg1, %c0_i32 : i32, i32, i32
  }
}

</mosaic_0001>

<bundles_post_ra>
// kernel: tpu_custom_call.1
= control target key start
LH: loop header
LB: loop body
LE: loop exit
PB: predicated region body
PF: predicated region fallthrough
CT: control target
= control target key end

     0   :  { %10 = vsyncpa [#allocation3], 0  ;;  %s1914_s0 = inlined_call_operand.vmem [shape: f32[2,2,12,256], index: 0, kind: input, shape index: {}]   ;;  %s1915_s1 = inlined_call_operand.hbm [shape: f32[3,256,256], index: 1, kind: input, shape index: {}]   ;;  %s1916_s2 = inlined_call_operand.vmem [shape: f32[1,256], index: 2, kind: input, shape index: {}]   ;;  %s1917_s3 = inlined_call_operand.hbm [shape: f32[3,256,256], index: 3, kind: input, shape index: {}]   ;;  %s1918_s4 = inlined_call_operand.vmem [shape: f32[1,256], index: 4, kind: input, shape index: {}]   ;;  %s1919_s5 = inlined_call_operand.hbm [shape: f32[2,16,256], index: 5, kind: output, shape index: {}]  }
   0x1   :  { %11 = vsyncpa [#allocation6], 0 }
   0x2   :  { %12 = vsyncpa [#allocation4], 0 }
   0x3   :  { %14 = vsyncpa [#allocation4 + $0x1], 0  ;;  %s1654_s18 = smov 0   ;;  %s1656_s19 = smov 0  }
   0x4   :  { %s1658_s20 = smov 0   ;;  %s1660_s21 = smov 0  }
   0x5   :  { %s1662_s22 = smov 0   ;;  %s1664_s23 = smov 0  }
   0x6   :  { %s1666_s24 = smov 0   ;;  %s1668_s25 = smov 0  }
   0x7 LB: > { %s1348_s26 = sadd.s32 4294967295, %s1617_s25   ;;  %s1349_s27 = sadd.s32 4294967294, %s1617_s25   ;;  %s1617_s25 = sphi %s1668_s25, %s20_s25   ;;  %s1613_s24 = sphi %s1666_s24, %s1934_s24   ;;  %s1609_s23 = sphi %s1664_s23, %s1933_s23   ;;  %s1605_s22 = sphi %s1662_s22, %s1932_s22   ;;  %s1601_s21 = sphi %s1660_s21, %s1931_s21   ;;  %s1597_s20 = sphi %s1658_s20, %s1930_s20   ;;  %s1593_s19 = sphi %s1656_s19, %s1929_s19   ;;  %s1589_s18 = sphi %s1654_s18, %s1928_s18  }
   0x8   : > { %s29_s28 = sadd.s32 1, %s1609_s23  ;;  %s32_s29 = sadd.s32 1, %s1613_s24 }
   0x9   : > { %p30_p0 = scmp.ge.s32.totalorder %s29_s28, 2  ;;  %s153_s30 = sadd.s32 1, %s1597_s20 }
   0xa   : > { %p163_p1 = scmp.ne.s32.totalorder %s1597_s20, %s1593_s19  ;;  %p164_p2 = scmp.eq.s32.totalorder %s1348_s26, 3 }
   0xb   : > { %s1936_s28 = smov (%p30_p0, %s29_s28), 0  ;;  %s1938_s29 = smov (!%p30_p0, %s32_s29), %s1613_s24 }
   0xc   : > { %s149_s6 = ssub.s32 %s1609_s23, %s1936_s28  ;;  %p1706_p3 = por %p164_p2, %p163_p1 }
   0xd   : > { %p34_p4 = scmp.ge.s32.totalorder %s1938_s29, 2  ;;  %p169_p5 = scmp.ne.s32.totalorder %s1593_s19, %s1589_s18 }
   0xe   : > { %p170_p6 = scmp.eq.s32.totalorder %s1349_s27, 3  ;;  %p1350_p7 = scmp.ge.s32.totalorder %s1617_s25, 1 }
   0xf   : > { %s1940_s29 = smov (%p34_p4, %s1938_s29), 0  ;;  %p177_p9 = scmp.lt.s32.totalorder %s1617_s25, 5 }
  0x10   : > { %1922 = sst [smem:[#allocation11_spill]] %s1940_s29  ;;  %p1715_p8 = por %p170_p6, %p169_p5 }
  0x11   : > { %s148_s9 = ssub.s32 %s1613_s24, %s1940_s29  ;;  %p1722_p10 = pnand %p1350_p7, %p177_p9 }
  0x12   : > { %s150_s10 = sor.u32 %s149_s6, %s148_s9  ;;  %p1726_p12 = scmp.eq.s32.totalorder %s1348_s26, 0 }
  0x13   : > { %p151_p11 = scmp.eq.s32.totalorder %s150_s10, 0  ;;  %p1381_p13 = pneg %p1722_p10 }
  0x14   : > { %s1619_s14 = smov [#allocation2]  }
  0x15   : > { %s1733_s13 = scalar_select %p151_p11, %s1597_s20, %s153_s30  }
  0x16   : > { %s189_s15 = sshll.u32 %s1619_s14, 4  ;;  %p1737_p0 = pnand %p1726_p12, %p1381_p13  ;;  %s190_s15 = int_to_ptr.vmem [resolvable:$true] %s189_s15 }
  0x17   : > { %s1476_s17 = scalar_lea.vmem %s190_s15, 24576  ;;  %p1484_p6 = scmp.lt.s32.totalorder %s190_s15, %s190_s15 }
  0x18   : > { %p1467_p1 = pneg %p1737_p0  ;;  %p1477_p2 = scmp.ne.s32.totalorder %s190_s15, %s1476_s17 }
  0x19   : > { %p1485_p7 = scmp.lt.s32.totalorder %s1476_s17, %s1476_s17 }
  0x1a   : > { %p1479_p4 = pnand %p1477_p2, %p1467_p1 }
  0x1b   : > { %p1486_p9 = por %p1485_p7, %p1484_p6 }
  0x1c   : > { %p1480_p5 = pneg %p1479_p4 }
  0x1e   : > { %p1487_p11 = pnand %p1486_p9, %p1480_p5 }
  0x20   : > { %1490 = shalt.err (!%p1487_p11)
}
  0x21   : > { %s1620_s26 = smov 256   ;;  %s1621_s27 = smov 16  }
  0x22   : > { %1384 = dma.hbm_to_vmem [thread:$0]  (!%p1737_p0), %s1915_s1, 24576, %s190_s15, [#allocation3], %s1620_s26, %s1620_s26, %s1621_s27  }
  0x23   : > { %s1622_s9 = smov [#allocation5]  }
  0x24   : > { %s205_s10 = sshll.u32 %s1622_s9, 4  ;;  %s206_s10 = int_to_ptr.vmem [resolvable:$true] %s205_s10 }
  0x25   : > { %s1502_s14 = scalar_lea.vmem %s206_s10, 24576  ;;  %p1510_p5 = scmp.lt.s32.totalorder %s206_s10, %s206_s10 }
  0x26   : > { %p1503_p13 = scmp.ne.s32.totalorder %s206_s10, %s1502_s14  ;;  %p1511_p6 = scmp.lt.s32.totalorder %s1502_s14, %s1502_s14 }
  0x28   : > { %p1505_p2 = pnand %p1503_p13, %p1467_p1  ;;  %p1512_p7 = por %p1511_p6, %p1510_p5 }
  0x2a   : > { %p1506_p4 = pneg %p1505_p2 }
  0x2c   : > { %p1513_p9 = pnand %p1512_p7, %p1506_p4 }
  0x2e   : > { %1516 = shalt.err (!%p1513_p9)
}
  0x2f   : > { %1387 = dma.hbm_to_vmem [thread:$0]  (!%p1737_p0), %s1917_s3, 24576, %s206_s10, [#allocation6], %s1620_s26, %s1620_s26, %s1621_s27  }
  0x30   : > { %236 = sbr.rel (%p1722_p10) target bundleno = 676 (0x2a4), region = 40 }
  0x35   : > { %1576 = dma.done.wait (%p1726_p12), [#allocation3], 24576  }
  0x36   : > { %1578 = vsyncadd (%p1726_p12), [#allocation3], 4294942720 }
  0x37   : > { %1580 = dma.done.wait (%p1726_p12), [#allocation6], 24576  }
  0x38   : > { %1582 = vsyncadd (%p1726_p12), [#allocation6], 4294942720  ;;  %v381_v0 = vld [vmem:[#allocation2 + $0x2f8] sm:$0xff]  ;;  %v380_v2 = vld [vmem:[#allocation2 + $0x2f0] sm:$0xff]  ;;  %p272_p10 = scmp.lt.s32.totalorder %s1605_s22, 1  ;;  %p274_p12 = scmp.lt.s32.totalorder %s1601_s21, 1 }
  0x39   : > { %v316_v1 = vld [vmem:[#allocation2 + $0xf8] sm:$0xff]  ;;  %429 = vmatprep.subr.mxu0 %v381_v0  ;;  %v315_v3 = vld [vmem:[#allocation2 + $0xf0] sm:$0xff]  ;;  %v379_v4 = vld [vmem:[#allocation2 + $0x2e8] sm:$0xff]  ;;  %vm648_vm0 = vcmask 1045504   ;;  %vm418_vm1 = vcmask 1046528   ;;  %s1361_s9 = sshll.u32 %s1601_s21, 3 }
  0x3a   : > { %506 = vmatprep.subr.mxu1 %v316_v1  ;;  %v314_v5 = vld [vmem:[#allocation2 + $0xe8] sm:$0xff]  ;;  %430 = vmatpush1.msra.mxu0 %v380_v2  ;;  %v378_v6 = vld [vmem:[#allocation2 + $0x2e0] sm:$0xff]  ;;  %v377_v8 = vld [vmem:[#allocation2 + $0x2d8] sm:$0xff]  ;;  %s1774_s29 = scalar_select %p272_p10, %s1605_s22, 1 }
  0x3b   : > { %507 = vmatpush1.msra.mxu1 %v315_v3  ;;  %v313_v7 = vld [vmem:[#allocation2 + $0xe0] sm:$0xff]  ;;  %431 = vmatprep.subr.mxu0 %v379_v4  ;;  %v312_v9 = vld [vmem:[#allocation2 + $0xd8] sm:$0xff]  ;;  %v376_v10 = vld [vmem:[#allocation2 + $0x2d0] sm:$0xff]  ;;  %s1779_s11 = scalar_select %p274_p12, %s1601_s21, 1 }
  0x3c   : > { %508 = vmatprep.subr.mxu1 %v314_v5  ;;  %v311_v11 = vld [vmem:[#allocation2 + $0xd0] sm:$0xff]  ;;  %432 = vmatpush1.msra.mxu0 %v378_v6  ;;  %v375_v12 = vld [vmem:[#allocation2 + $0x2c8] sm:$0xff]  ;;  %v374_v14 = vld [vmem:[#allocation2 + $0x2c0] sm:$0xff]  ;;  %s1359_s15 = sshll.u32 %s1774_s29, 3  ;;  %s1362_s10 = sadd.s32 4294967295, %s1361_s9 }
  0x3d   : > { %509 = vmatpush1.msra.mxu1 %v313_v7  ;;  %v310_v13 = vld [vmem:[#allocation2 + $0xc8] sm:$0xff]  ;;  %433 = vmatprep.subr.mxu0 %v377_v8  ;;  %v309_v15 = vld [vmem:[#allocation2 + $0xc0] sm:$0xff]  ;;  %v373_v16 = vld [vmem:[#allocation2 + $0x2b8] sm:$0xff]  ;;  %s1358_s12 = sshll.u32 %s1779_s11, 2  ;;  %s269_s29 = sand.u32 1, %s1593_s19  }
  0x3e   : > { %510 = vmatprep.subr.mxu1 %v312_v9  ;;  %434 = vmatpush1.msra.mxu0 %v376_v10  ;;  %v308_v17 = vld [vmem:[#allocation2 + $0xb8] sm:$0xff]  ;;  %v372_v18 = vld [vmem:[#allocation2 + $0x2b0] sm:$0xff]  ;;  %v371_v20 = vld [vmem:[#allocation2 + $0x2a8] sm:$0xff]  ;;  %s278_s16 = sadd.s32 %s1359_s15, %s1358_s12  ;;  %s1357_s11 = sshll.u32 %s269_s29, 4 }
  0x3f   : > { %511 = vmatpush1.msra.mxu1 %v311_v11  ;;  %435 = vmatprep.subr.mxu0 %v375_v12  ;;  %v307_v19 = vld [vmem:[#allocation2 + $0xb0] sm:$0xff]  ;;  %v306_v21 = vld [vmem:[#allocation2 + $0xa8] sm:$0xff]  ;;  %v370_v22 = vld [vmem:[#allocation2 + $0x2a0] sm:$0xff]  ;;  %s1360_s26 = sshll.u32 %s278_s16, 3  ;;  %s1366_s16 = sshll.u32 %s1601_s21, 1 }
  0x40   : > { %512 = vmatprep.subr.mxu1 %v310_v13  ;;  %436 = vmatpush1.msra.mxu0 %v374_v14  ;;  %v305_v23 = vld [vmem:[#allocation2 + $0xa0] sm:$0xff]  ;;  %v369_v24 = vld [vmem:[#allocation2 + $0x298] sm:$0xff]  ;;  %v368_v26 = vld [vmem:[#allocation2 + $0x290] sm:$0xff]  ;;  %s1786_s6 = scalar_lea.vmem %s1914_s0, %s1360_s26  ;;  %s1367_s26 = sshll.u32 %s1605_s22, 2 }
  0x41   : > { %513 = vmatpush1.msra.mxu1 %v309_v15  ;;  %437 = vmatprep.subr.mxu0 %v373_v16  ;;  %v304_v25 = vld [vmem:[#allocation2 + $0x98] sm:$0xff]  ;;  %v303_v27 = vld [vmem:[#allocation2 + $0x90] sm:$0xff]  ;;  %v367_v28 = vld [vmem:[#allocation2 + $0x288] sm:$0xff]  ;;  %s1240_s27 = sadd.s32 %s1367_s26, %s1366_s16  ;;  %s1228_s14 = scalar_lea.sflag [#allocation4], %s269_s29 }
  0x42   : > { %514 = vmatprep.subr.mxu1 %v308_v17  ;;  %438 = vmatpush1.msra.mxu0 %v372_v18  ;;  %v302_v29 = vld [vmem:[#allocation2 + $0x88] sm:$0xff]  ;;  %v366_v30 = vld [vmem:[#allocation2 + $0x280] sm:$0xff]  ;;  %v365_v32 = vld [vmem:[#allocation2 + $0x278] sm:$0xff]  ;;  %s1368_s30 = sshll.u32 %s1240_s27, 7  ;;  %s1623_s12 = smov [#allocation7]  }
  0x43   : > { %515 = vmatpush1.msra.mxu1 %v307_v19  ;;  %439 = vmatprep.subr.mxu0 %v371_v20  ;;  %v301_v31 = vld [vmem:[#allocation2 + $0x80] sm:$0xff]  ;;  %v300_v33 = vld [vmem:[#allocation2 + $0x78] sm:$0xff]  ;;  %v364_v34 = vld [vmem:[#allocation2 + $0x270] sm:$0xff]  ;;  %s1521_s15 = sshll.u32 %s1623_s12, 4  ;;  %s1522_s15 = int_to_ptr.vmem [resolvable:$false] %s1521_s15 }
  0x44   : > { %516 = vmatprep.subr.mxu1 %v306_v21  ;;  %440 = vmatpush1.msra.mxu0 %v370_v22  ;;  %v299_v35 = vld [vmem:[#allocation2 + $0x70] sm:$0xff]  ;;  %v363_v36 = vld [vmem:[#allocation2 + $0x268] sm:$0xff]  ;;  %v362_v38 = vld [vmem:[#allocation2 + $0x260] sm:$0xff] }
  0x45   : > { %517 = vmatpush1.msra.mxu1 %v305_v23  ;;  %441 = vmatprep.subr.mxu0 %v369_v24  ;;  %v298_v37 = vld [vmem:[#allocation2 + $0x68] sm:$0xff]  ;;  %v297_v39 = vld [vmem:[#allocation2 + $0x60] sm:$0xff]  ;;  %v361_v40 = vld [vmem:[#allocation2 + $0x258] sm:$0xff] }
  0x46   : > { %518 = vmatprep.subr.mxu1 %v304_v25  ;;  %442 = vmatpush1.msra.mxu0 %v368_v26  ;;  %v296_v41 = vld [vmem:[#allocation2 + $0x58] sm:$0xff]  ;;  %v360_v42 = vld [vmem:[#allocation2 + $0x250] sm:$0xff]  ;;  %v359_v44 = vld [vmem:[#allocation2 + $0x248] sm:$0xff] }
  0x47   : > { %519 = vmatpush1.msra.mxu1 %v303_v27  ;;  %443 = vmatprep.subr.mxu0 %v367_v28  ;;  %v295_v43 = vld [vmem:[#allocation2 + $0x50] sm:$0xff]  ;;  %v294_v45 = vld [vmem:[#allocation2 + $0x48] sm:$0xff]  ;;  %v358_v46 = vld [vmem:[#allocation2 + $0x240] sm:$0xff] }
  0x48   : > { %520 = vmatprep.subr.mxu1 %v302_v29  ;;  %444 = vmatpush1.msra.mxu0 %v366_v30  ;;  %v293_v47 = vld [vmem:[#allocation2 + $0x40] sm:$0xff]  ;;  %v357_v48 = vld [vmem:[#allocation2 + $0x238] sm:$0xff]  ;;  %v356_v50 = vld [vmem:[#allocation2 + $0x230] sm:$0xff] }
  0x49   : > { %521 = vmatpush1.msra.mxu1 %v301_v31  ;;  %445 = vmatprep.subr.mxu0 %v365_v32  ;;  %v292_v49 = vld [vmem:[#allocation2 + $0x38] sm:$0xff]  ;;  %v291_v51 = vld [vmem:[#allocation2 + $0x30] sm:$0xff]  ;;  %v355_v52 = vld [vmem:[#allocation2 + $0x228] sm:$0xff] }
  0x4a   : > { %522 = vmatprep.subr.mxu1 %v300_v33  ;;  %446 = vmatpush1.msra.mxu0 %v364_v34  ;;  %v290_v53 = vld [vmem:[#allocation2 + $0x28] sm:$0xff]  ;;  %v354_v54 = vld [vmem:[#allocation2 + $0x220] sm:$0xff]  ;;  %v353_v56 = vld [vmem:[#allocation2 + $0x218] sm:$0xff] }
  0x4b   : > { %523 = vmatpush1.msra.mxu1 %v299_v35  ;;  %447 = vmatprep.subr.mxu0 %v363_v36  ;;  %v289_v55 = vld [vmem:[#allocation2 + $0x20] sm:$0xff]  ;;  %v288_v57 = vld [vmem:[#allocation2 + $0x18] sm:$0xff]  ;;  %v352_v58 = vld [vmem:[#allocation2 + $0x210] sm:$0xff] }
  0x4c   : > { %524 = vmatprep.subr.mxu1 %v298_v37  ;;  %448 = vmatpush1.msra.mxu0 %v362_v38  ;;  %v287_v59 = vld [vmem:[#allocation2 + $0x10] sm:$0xff]  ;;  %v351_v60 = vld [vmem:[#allocation2 + $0x208] sm:$0xff]  ;;  %v350_v62 = vld [vmem:[#allocation2 + $0x200] sm:$0xff] }
  0x4d   : > { %525 = vmatpush1.msra.mxu1 %v297_v39  ;;  %449 = vmatprep.subr.mxu0 %v361_v40  ;;  %v286_v61 = vld [vmem:[#allocation2 + $0x8] sm:$0xff]  ;;  %v285_v63 = vld [vmem:[#allocation2] sm:$0xff]  ;;  %v413_v0 = vld [vmem:[#allocation2 + $0x3f8] sm:$0xff] }
  0x4e   : > { %526 = vmatprep.subr.mxu1 %v296_v41  ;;  %450 = vmatpush1.msra.mxu0 %v360_v42  ;;  %v348_v1 = vld [vmem:[#allocation2 + $0x1f8] sm:$0xff]  ;;  %v412_v2 = vld [vmem:[#allocation2 + $0x3f0] sm:$0xff]  ;;  %v411_v4 = vld [vmem:[#allocation2 + $0x3e8] sm:$0xff] }
  0x4f   : > { %527 = vmatpush1.msra.mxu1 %v295_v43  ;;  %451 = vmatprep.subr.mxu0 %v359_v44  ;;  %v347_v3 = vld [vmem:[#allocation2 + $0x1f0] sm:$0xff]  ;;  %v346_v5 = vld [vmem:[#allocation2 + $0x1e8] sm:$0xff]  ;;  %v410_v6 = vld [vmem:[#allocation2 + $0x3e0] sm:$0xff] }
  0x50   : > { %528 = vmatprep.subr.mxu1 %v294_v45  ;;  %452 = vmatpush1.msra.mxu0 %v358_v46  ;;  %v345_v7 = vld [vmem:[#allocation2 + $0x1e0] sm:$0xff]  ;;  %v409_v8 = vld [vmem:[#allocation2 + $0x3d8] sm:$0xff]  ;;  %v408_v10 = vld [vmem:[#allocation2 + $0x3d0] sm:$0xff] }
  0x51   : > { %529 = vmatpush1.msra.mxu1 %v293_v47  ;;  %453 = vmatprep.subr.mxu0 %v357_v48  ;;  %v344_v9 = vld [vmem:[#allocation2 + $0x1d8] sm:$0xff]  ;;  %v343_v11 = vld [vmem:[#allocation2 + $0x1d0] sm:$0xff]  ;;  %v407_v12 = vld [vmem:[#allocation2 + $0x3c8] sm:$0xff] }
  0x52   : > { %530 = vmatprep.subr.mxu1 %v292_v49  ;;  %454 = vmatpush1.msra.mxu0 %v356_v50  ;;  %v342_v13 = vld [vmem:[#allocation2 + $0x1c8] sm:$0xff]  ;;  %v406_v14 = vld [vmem:[#allocation2 + $0x3c0] sm:$0xff]  ;;  %v405_v16 = vld [vmem:[#allocation2 + $0x3b8] sm:$0xff] }
  0x53   : > { %531 = vmatpush1.msra.mxu1 %v291_v51  ;;  %455 = vmatprep.subr.mxu0 %v355_v52  ;;  %v341_v15 = vld [vmem:[#allocation2 + $0x1c0] sm:$0xff]  ;;  %v340_v17 = vld [vmem:[#allocation2 + $0x1b8] sm:$0xff]  ;;  %v404_v18 = vld [vmem:[#allocation2 + $0x3b0] sm:$0xff] }
  0x54   : > { %532 = vmatprep.subr.mxu1 %v290_v53  ;;  %456 = vmatpush1.msra.mxu0 %v354_v54  ;;  %v339_v19 = vld [vmem:[#allocation2 + $0x1b0] sm:$0xff]  ;;  %v403_v20 = vld [vmem:[#allocation2 + $0x3a8] sm:$0xff]  ;;  %v402_v22 = vld [vmem:[#allocation2 + $0x3a0] sm:$0xff] }
  0x55   : > { %533 = vmatpush1.msra.mxu1 %v289_v55  ;;  %457 = vmatprep.subr.mxu0 %v353_v56  ;;  %v338_v21 = vld [vmem:[#allocation2 + $0x1a8] sm:$0xff]  ;;  %v337_v23 = vld [vmem:[#allocation2 + $0x1a0] sm:$0xff]  ;;  %v401_v24 = vld [vmem:[#allocation2 + $0x398] sm:$0xff] }
  0x56   : > { %534 = vmatprep.subr.mxu1 %v288_v57  ;;  %458 = vmatpush1.msra.mxu0 %v352_v58  ;;  %v336_v25 = vld [vmem:[#allocation2 + $0x198] sm:$0xff]  ;;  %v400_v26 = vld [vmem:[#allocation2 + $0x390] sm:$0xff]  ;;  %v399_v28 = vld [vmem:[#allocation2 + $0x388] sm:$0xff] }
  0x57   : > { %535 = vmatpush1.msra.mxu1 %v287_v59  ;;  %459 = vmatprep.subr.mxu0 %v351_v60  ;;  %v335_v27 = vld [vmem:[#allocation2 + $0x190] sm:$0xff]  ;;  %v334_v29 = vld [vmem:[#allocation2 + $0x188] sm:$0xff]  ;;  %v1789_v30 = vld [vmem:[%s1786_s6] sm:$0xff] }
  0x58   : > { %536 = vmatprep.subr.mxu1 %v286_v61  ;;  %460 = vmatpush1.msra.mxu0 %v350_v62  ;;  %v1792_v31 = vld [vmem:[%s1786_s6 + $0x10] sm:$0xf]  ;;  %v398_v32 = vld [vmem:[#allocation2 + $0x380] sm:$0xff]  ;;  %v649_v34 = vrot.slane %v1789_v30, 2  ;;  %v397_v36 = vld [vmem:[#allocation2 + $0x378] sm:$0xff] }
  0x59   : > { %537 = vmatpush1.msra.mxu1 %v285_v63  ;;  %461 = vmatprep.subr.mxu0 %v413_v0  ;;  %v333_v33 = vld [vmem:[#allocation2 + $0x180] sm:$0xff]  ;;  %v650_v35 = vrot.slane %v1792_v31, 2  ;;  %v332_v37 = vld [vmem:[#allocation2 + $0x178] sm:$0xff]  ;;  %v396_v38 = vld [vmem:[#allocation2 + $0x370] sm:$0xff] }
  0x5a   : > { %538 = vmatprep.subr.mxu1 %v348_v1  ;;  %462 = vmatpush2.msra.mxu0 %v412_v2  ;;  %v331_v39 = vld [vmem:[#allocation2 + $0x170] sm:$0xff]  ;;  %v395_v41 = vld [vmem:[#allocation2 + $0x368] sm:$0xff]  ;;  %v394_v43 = vld [vmem:[#allocation2 + $0x360] sm:$0xff] }
  0x5b   : > { %539 = vmatpush2.msra.mxu1 %v347_v3  ;;  %463 = vmatprep.subr.mxu0 %v411_v4  ;;  %v1799_v40 = vsel %vm648_vm0, %v649_v34, %v650_v35  ;;  %v330_v42 = vld [vmem:[#allocation2 + $0x168] sm:$0xff]  ;;  %v329_v44 = vld [vmem:[#allocation2 + $0x160] sm:$0xff]  ;;  %v393_v45 = vld [vmem:[#allocation2 + $0x358] sm:$0xff] }
  0x5c   : > { %540 = vmatprep.subr.mxu1 %v346_v5  ;;  %464 = vmatpush2.msra.mxu0 %v410_v6  ;;  %v328_v46 = vld [vmem:[#allocation2 + $0x158] sm:$0xff]  ;;  %v392_v47 = vld [vmem:[#allocation2 + $0x350] sm:$0xff]  ;;  %v391_v49 = vld [vmem:[#allocation2 + $0x348] sm:$0xff]  ;;  %v419_v5 = vrot.slane %v1789_v30, 1  ;;  %v1810_v6 = vrot.slane %v1792_v31, 1 }
  0x5d   : > { %541 = vmatpush2.msra.mxu1 %v345_v7  ;;  %465 = vmatprep.subr.mxu0 %v409_v8  ;;  %v327_v48 = vld [vmem:[#allocation2 + $0x150] sm:$0xff]  ;;  %v326_v50 = vld [vmem:[#allocation2 + $0x148] sm:$0xff]  ;;  %v390_v51 = vld [vmem:[#allocation2 + $0x340] sm:$0xff] }
  0x5e   : > { %542 = vmatprep.subr.mxu1 %v344_v9  ;;  %466 = vmatpush2.msra.mxu0 %v408_v10  ;;  %v325_v52 = vld [vmem:[#allocation2 + $0x140] sm:$0xff]  ;;  %v389_v53 = vld [vmem:[#allocation2 + $0x338] sm:$0xff]  ;;  %v282_v55 = vld [vmem:[%s1786_s6 + $0x8] sm:$0xff] }
  0x5f   : > { %543 = vmatpush2.msra.mxu1 %v343_v11  ;;  %467 = vmatprep.subr.mxu0 %v407_v12  ;;  %v324_v54 = vld [vmem:[#allocation2 + $0x138] sm:$0xff]  ;;  %v388_v57 = vld [vmem:[#allocation2 + $0x330] sm:$0xff]  ;;  %v387_v59 = vld [vmem:[#allocation2 + $0x328] sm:$0xff]  ;;  %v422_v63 = vrot.slane %v282_v55, 1  ;;  %v1818_v12 = vsel %vm418_vm1, %v419_v5, %v1810_v6 }
  0x60   : > { %544 = vmatprep.subr.mxu1 %v342_v13  ;;  %468 = vmatpush2.msra.mxu0 %v406_v14  ;;  %v1803_v56 = vld [vmem:[%s1786_s6 + $0x18] sm:$0xf]  ;;  %v323_v58 = vld [vmem:[#allocation2 + $0x130] sm:$0xff]  ;;  %v322_v60 = vld [vmem:[#allocation2 + $0x128] sm:$0xff]  ;;  %s271_s6 = scalar_lea.vmem [#allocation7], %s1357_s11  ;;  %s1523_s11 = scalar_lea.vmem %s1522_s15, 512 }
  0x61   : > { %545 = vmatpush2.msra.mxu1 %v341_v15  ;;  %469 = vmatprep.subr.mxu0 %v405_v16  ;;  %v386_v61 = vld [vmem:[#allocation2 + $0x320] sm:$0xff]  ;;  %v1806_v0 = vrot.slane %v1803_v56, 1  ;;  %v385_v1 = vld [vmem:[#allocation2 + $0x318] sm:$0xff]  ;;  %v384_v3 = vld [vmem:[#allocation2 + $0x310] sm:$0xff]  ;;  %v652_v15 = vrot.slane %v282_v55, 2  ;;  %v653_v16 = vrot.slane %v1803_v56, 2 }
  0x62   : > { %546 = vmatprep.subr.mxu1 %v340_v17  ;;  %470 = vmatpush2.msra.mxu0 %v404_v18  ;;  %v321_v62 = vld [vmem:[#allocation2 + $0x120] sm:$0xff]  ;;  %v320_v2 = vld [vmem:[#allocation2 + $0x118] sm:$0xff]  ;;  %v319_v4 = vld [vmem:[#allocation2 + $0x110] sm:$0xff]  ;;  %s1244_s9 = sshll.u32 %s271_s6, 4  ;;  %s1245_s9 = int_to_ptr.vmem [resolvable:$true] %s1244_s9 }
  0x63   : > { %547 = vmatpush2.msra.mxu1 %v339_v19  ;;  %471 = vmatprep.subr.mxu0 %v403_v20  ;;  %v383_v7 = vld [vmem:[#allocation2 + $0x308] sm:$0xff]  ;;  %v382_v9 = vld [vmem:[#allocation2 + $0x300] sm:$0xff]  ;;  %v1814_v10 = vsel %vm418_vm1, %v422_v63, %v1806_v0  ;;  %v615_v13 = vld [vmem:[#allocation2 + $0x4f8] sm:$0xff]  ;;  %s1517_s17 = scalar_lea.vmem %s1245_s9, 256  ;;  %p1524_p13 = scmp.lt.s32.totalorder %s1245_s9, %s1522_s15 }
  0x64   : > { %548 = vmatprep.subr.mxu1 %v338_v21  ;;  %472 = vmatpush2.msra.mxu0 %v402_v22  ;;  %v318_v8 = vld [vmem:[#allocation2 + $0x108] sm:$0xff]  ;;  %v317_v11 = vld [vmem:[#allocation2 + $0x100] sm:$0xff]  ;;  %v614_v14 = vld [vmem:[#allocation2 + $0x4f0] sm:$0xff]  ;;  %v654_v21 = vsel %vm648_vm0, %v652_v15, %v653_v16  ;;  %p1518_p0 = scmp.ne.s32.totalorder %s1245_s9, %s1517_s17  ;;  %p1525_p2 = scmp.lt.s32.totalorder %s1523_s11, %s1517_s17 }
  0x65   : > { %549 = vmatpush2.msra.mxu1 %v337_v23  ;;  %473 = vmatprep.subr.mxu0 %v401_v24  ;;  %v613_v17 = vld [vmem:[#allocation2 + $0x4e8] sm:$0xff]  ;;  %v612_v18 = vld [vmem:[#allocation2 + $0x4e0] sm:$0xff]  ;;  %v611_v19 = vld [vmem:[#allocation2 + $0x4d8] sm:$0xff] }
  0x66   : > { %550 = vmatprep.subr.mxu1 %v336_v25  ;;  %474 = vmatpush2.msra.mxu0 %v400_v26  ;;  %v610_v20 = vld [vmem:[#allocation2 + $0x4d0] sm:$0xff]  ;;  %v609_v22 = vld [vmem:[#allocation2 + $0x4c8] sm:$0xff]  ;;  %v608_v23 = vld [vmem:[#allocation2 + $0x4c0] sm:$0xff]  ;;  %p1519_p1 = pnand %p1518_p0, %p1706_p3  ;;  %p1526_p4 = por %p1525_p2, %p1524_p13 }
  0x67   : > { %551 = vmatpush2.msra.mxu1 %v335_v27  ;;  %475 = vmatprep.subr.mxu0 %v399_v28  ;;  %v607_v24 = vld [vmem:[#allocation2 + $0x4b8] sm:$0xff]  ;;  %v606_v25 = vld [vmem:[#allocation2 + $0x4b0] sm:$0xff]  ;;  %v605_v26 = vld [vmem:[#allocation2 + $0x4a8] sm:$0xff] }
  0x68   : > { %552 = vmatprep.subr.mxu1 %v334_v29  ;;  %476 = vmatpush2.msra.mxu0 %v398_v32  ;;  %v604_v27 = vld [vmem:[#allocation2 + $0x4a0] sm:$0xff]  ;;  %v603_v28 = vld [vmem:[#allocation2 + $0x498] sm:$0xff]  ;;  %v602_v29 = vld [vmem:[#allocation2 + $0x490] sm:$0xff]  ;;  %p1520_p11 = pneg %p1519_p1 }
  0x69   : > { %553 = vmatpush2.msra.mxu1 %v333_v33  ;;  %477 = vmatprep.subr.mxu0 %v397_v36  ;;  %v600_v32 = vld [vmem:[#allocation2 + $0x480] sm:$0xff]  ;;  %v599_v33 = vld [vmem:[#allocation2 + $0x478] sm:$0xff]  ;;  %v598_v34 = vld [vmem:[#allocation2 + $0x470] sm:$0xff] }
  0x6a   : > { %554 = vmatprep.subr.mxu1 %v332_v37  ;;  %478 = vmatpush2.msra.mxu0 %v396_v38  ;;  %v597_v36 = vld [vmem:[#allocation2 + $0x468] sm:$0xff]  ;;  %v596_v37 = vld [vmem:[#allocation2 + $0x460] sm:$0xff]  ;;  %v595_v38 = vld [vmem:[#allocation2 + $0x458] sm:$0xff]  ;;  %p1527_p5 = pnand %p1526_p4, %p1520_p11 }
  0x6b   : > { %555 = vmatpush2.msra.mxu1 %v331_v39  ;;  %479 = vmatprep.subr.mxu0 %v395_v41  ;;  %v594_v39 = vld [vmem:[#allocation2 + $0x450] sm:$0xff]  ;;  %v593_v41 = vld [vmem:[#allocation2 + $0x448] sm:$0xff]  ;;  %v636_v63 = vld [vmem:[#allocation2 + $0x5a0] sm:$0xff] }
  0x6c   : > { %556 = vmatprep.subr.mxu1 %v330_v42  ;;  %480 = vmatpush2.msra.mxu0 %v394_v43  ;;  %v592_v42 = vld [vmem:[#allocation2 + $0x440] sm:$0xff]  ;;  %v591_v43 = vld [vmem:[#allocation2 + $0x438] sm:$0xff] }
  0x6d   : > { %557 = vmatpush2.msra.mxu1 %v329_v44  ;;  %481 = vmatprep.subr.mxu0 %v393_v45  ;;  %v590_v44 = vld [vmem:[#allocation2 + $0x430] sm:$0xff]  ;;  %v589_v45 = vld [vmem:[#allocation2 + $0x428] sm:$0xff]  ;;  %v631_v5 = vld [vmem:[#allocation2 + $0x578] sm:$0xff] }
  0x6e   : > { %558 = vmatprep.subr.mxu1 %v328_v46  ;;  %482 = vmatpush2.msra.mxu0 %v392_v47  ;;  %v588_v46 = vld [vmem:[#allocation2 + $0x420] sm:$0xff]  ;;  %v587_v47 = vld [vmem:[#allocation2 + $0x418] sm:$0xff] }
  0x6f   : > { %559 = vmatpush2.msra.mxu1 %v327_v48  ;;  %483 = vmatprep.subr.mxu0 %v391_v49  ;;  %v586_v48 = vld [vmem:[#allocation2 + $0x410] sm:$0xff]  ;;  %v585_v49 = vld [vmem:[#allocation2 + $0x408] sm:$0xff]  ;;  %v624_v15 = vld [vmem:[#allocation2 + $0x540] sm:$0xff] }
  0x70   : > { %560 = vmatprep.subr.mxu1 %v326_v50  ;;  %484 = vmatpush2.msra.mxu0 %v390_v51  ;;  %v584_v50 = vld [vmem:[#allocation2 + $0x400] sm:$0xff]  ;;  %v647_v51 = vld [vmem:[#allocation2 + $0x5f8] sm:$0xff] }
  0x71   : > { %561 = vmatpush2.msra.mxu1 %v325_v52  ;;  %485 = vmatprep.subr.mxu0 %v389_v53  ;;  %v646_v52 = vld [vmem:[#allocation2 + $0x5f0] sm:$0xff]  ;;  %v645_v53 = vld [vmem:[#allocation2 + $0x5e8] sm:$0xff] }
  0x72   : > { %562 = vmatprep.subr.mxu1 %v324_v54  ;;  %486 = vmatpush2.msra.mxu0 %v388_v57  ;;  %v644_v54 = vld [vmem:[#allocation2 + $0x5e0] sm:$0xff]  ;;  %v642_v57 = vld [vmem:[#allocation2 + $0x5d0] sm:$0xff] }
  0x73   : > { %563 = vmatpush2.msra.mxu1 %v323_v58  ;;  %487 = vmatprep.subr.mxu0 %v387_v59  ;;  %v641_v58 = vld [vmem:[#allocation2 + $0x5c8] sm:$0xff]  ;;  %v640_v59 = vld [vmem:[#allocation2 + $0x5c0] sm:$0xff] }
  0x74   : > { %564 = vmatprep.subr.mxu1 %v322_v60  ;;  %488 = vmatpush2.msra.mxu0 %v386_v61  ;;  %v639_v60 = vld [vmem:[#allocation2 + $0x5b8] sm:$0xff]  ;;  %v638_v61 = vld [vmem:[#allocation2 + $0x5b0] sm:$0xff] }
  0x75   : > { %565 = vmatpush2.msra.mxu1 %v321_v62  ;;  %489 = vmatprep.subr.mxu0 %v385_v1  ;;  %v637_v62 = vld [vmem:[#allocation2 + $0x5a8] sm:$0xff]  ;;  %v635_v1 = vld [vmem:[#allocation2 + $0x598] sm:$0xff] }
  0x76   : > { %566 = vmatprep.subr.mxu1 %v320_v2  ;;  %490 = vmatpush2.msra.mxu0 %v384_v3  ;;  %v634_v2 = vld [vmem:[#allocation2 + $0x590] sm:$0xff]  ;;  %v633_v3 = vld [vmem:[#allocation2 + $0x588] sm:$0xff] }
  0x77   : > { %567 = vmatpush2.msra.mxu1 %v319_v4  ;;  %491 = vmatprep.subr.mxu0 %v383_v7  ;;  %v632_v4 = vld [vmem:[#allocation2 + $0x580] sm:$0xff]  ;;  %v630_v7 = vld [vmem:[#allocation2 + $0x570] sm:$0xff] }
  0x78   : > { %568 = vmatprep.subr.mxu1 %v318_v8  ;;  %492 = vmatpush2.msra.mxu0 %v382_v9  ;;  %v629_v8 = vld [vmem:[#allocation2 + $0x568] sm:$0xff]  ;;  %v628_v9 = vld [vmem:[#allocation2 + $0x560] sm:$0xff] }
  0x79   : > { %493 = vmatprep.mubr.f32.mxu0 %v1814_v10  ;;  %569 = vmatpush2.msra.mxu1 %v317_v11  ;;  %v627_v11 = vld [vmem:[#allocation2 + $0x558] sm:$0xff] }
  0x7a   : > { %570 = vmatprep.mubr.f32.mxu1 %v282_v55  ;;  %494 = vmatmul.mubr.f32.vlgmr.msra.gmra.mxu0 %v1818_v12  ;;  %v643_v55 = vld [vmem:[#allocation2 + $0x5d8] sm:$0xff] }
  0x7b   : > { %571 = vmatmul.mubr.f32.vlgmr.msra.gmra.mxu1 %v1789_v30  ;;  %659 = vmatprep.subr.mxu0 %v615_v13  ;;  %v601_v30 = vld [vmem:[#allocation2 + $0x488] sm:$0xff]  ;;  %v626_v13 = vld [vmem:[#allocation2 + $0x550] sm:$0xff] }
  0x7c   : > { %499 = vmatprep.mubr.f32.mxu0 %v1806_v0  ;;  %660 = vmatpush1.msra.mxu0 %v614_v14  ;;  %v625_v14 = vld [vmem:[#allocation2 + $0x548] sm:$0xff] }
  0x7d   : > { %576 = vmatprep.mubr.f32.mxu1 %v1803_v56  ;;  %661 = vmatprep.subr.mxu0 %v613_v17  ;;  %v623_v17 = vld [vmem:[#allocation2 + $0x538] sm:$0xff]  ;;  %v807_v56 = vld [vmem:[#allocation5 + $0xc8] sm:$0xff] }
  0x7e   : > { %662 = vmatpush1.msra.mxu0 %v612_v18  ;;  %v622_v18 = vld [vmem:[#allocation2 + $0x530] sm:$0xff] }
  0x7f   : > { %577 = vmatmul.mubr.f32.gmra.mxu1 %v1792_v31  ;;  %663 = vmatprep.subr.mxu0 %v611_v19  ;;  %v621_v19 = vld [vmem:[#allocation2 + $0x528] sm:$0xff] }
  0x80   : > { %500 = vmatmul.mubr.f32.gmra.mxu0 %v1810_v6  ;;  %v872_v31 = vld [vmem:[#allocation5 + $0x2c8] sm:$0xff] }
  0x81   : > { %664 = vmatpush1.msra.mxu0 %v610_v20  ;;  %723 = vmatprep.mubr.f32.mxu0 %v654_v21  ;;  %v620_v20 = vld [vmem:[#allocation2 + $0x520] sm:$0xff]  ;;  %v619_v21 = vld [vmem:[#allocation2 + $0x518] sm:$0xff] }
  0x82   : > { %665 = vmatprep.subr.mxu0 %v609_v22  ;;  %v618_v22 = vld [vmem:[#allocation2 + $0x510] sm:$0xff] }
  0x83   : > { %666 = vmatpush1.msra.mxu0 %v608_v23  ;;  %v617_v23 = vld [vmem:[#allocation2 + $0x508] sm:$0xff] }
  0x84   : > { %667 = vmatprep.subr.mxu0 %v607_v24  ;;  %v616_v24 = vld [vmem:[#allocation2 + $0x500] sm:$0xff] }
  0x85   : > { %668 = vmatpush1.msra.mxu0 %v606_v25  ;;  %v813_v25 = vld [vmem:[#allocation5 + $0xf8] sm:$0xff] }
  0x86   : > { %669 = vmatprep.subr.mxu0 %v605_v26  ;;  %v812_v26 = vld [vmem:[#allocation5 + $0xf0] sm:$0xff] }
  0x87   : > { %670 = vmatpush1.msra.mxu0 %v604_v27  ;;  %v811_v27 = vld [vmem:[#allocation5 + $0xe8] sm:$0xff] }
  0x88   : > { %671 = vmatprep.subr.mxu0 %v603_v28  ;;  %v810_v28 = vld [vmem:[#allocation5 + $0xe0] sm:$0xff] }
  0x89   : > { %672 = vmatpush1.msra.mxu0 %v602_v29  ;;  %v878_v29 = vld [vmem:[#allocation5 + $0x2f8] sm:$0xff] }
  0x8a   : > { %673 = vmatprep.subr.mxu0 %v601_v30  ;;  %v809_v30 = vld [vmem:[#allocation5 + $0xd8] sm:$0xff]  ;;  %923 = vmatprep.subr.mxu1 %v878_v29  ;;  %v847_v29 = vld [vmem:[#allocation5 + $0x200] sm:$0xff] }
  0x8b   : > { %674 = vmatpush1.msra.mxu0 %v600_v32  ;;  %v877_v32 = vld [vmem:[#allocation5 + $0x2f0] sm:$0xff] }
  0x8c   : > { %675 = vmatprep.subr.mxu0 %v599_v33  ;;  %v876_v33 = vld [vmem:[#allocation5 + $0x2e8] sm:$0xff]  ;;  %924 = vmatpush1.msra.mxu1 %v877_v32  ;;  %v910_v32 = vld [vmem:[#allocation5 + $0x3f8] sm:$0xff] }
  0x8d   : > { %676 = vmatpush1.msra.mxu0 %v598_v34  ;;  %v808_v34 = vld [vmem:[#allocation5 + $0xd0] sm:$0xff]  ;;  %925 = vmatprep.subr.mxu1 %v876_v33  ;;  %v843_v33 = vld [vmem:[#allocation5 + $0x1e8] sm:$0xff] }
  0x8e   : > { %677 = vmatprep.subr.mxu0 %v597_v36  ;;  %v873_v36 = vld [vmem:[#allocation5 + $0x2d0] sm:$0xff] }
  0x8f   : > { %678 = vmatpush1.msra.mxu0 %v596_v37  ;;  %v806_v37 = vld [vmem:[#allocation5 + $0xc0] sm:$0xff] }
  0x90   : > { %679 = vmatprep.subr.mxu0 %v595_v38  ;;  %v871_v38 = vld [vmem:[#allocation5 + $0x2c0] sm:$0xff] }
  0x91   : > { %680 = vmatpush1.msra.mxu0 %v594_v39  ;;  %v804_v39 = vld [vmem:[#allocation5 + $0xb0] sm:$0xff] }
  0x92   : > { %681 = vmatprep.subr.mxu0 %v593_v41  ;;  %v870_v41 = vld [vmem:[#allocation5 + $0x2b8] sm:$0xff] }
  0x93   : > { %682 = vmatpush1.msra.mxu0 %v592_v42  ;;  %v803_v42 = vld [vmem:[#allocation5 + $0xa8] sm:$0xff] }
  0x94   : > { %683 = vmatprep.subr.mxu0 %v591_v43  ;;  %v869_v43 = vld [vmem:[#allocation5 + $0x2b0] sm:$0xff] }
  0x95   : > { %684 = vmatpush1.msra.mxu0 %v590_v44  ;;  %v802_v44 = vld [vmem:[#allocation5 + $0xa0] sm:$0xff] }
  0x96   : > { %685 = vmatprep.subr.mxu0 %v589_v45  ;;  %v868_v45 = vld [vmem:[#allocation5 + $0x2a8] sm:$0xff] }
  0x97   : > { %686 = vmatpush1.msra.mxu0 %v588_v46  ;;  %v801_v46 = vld [vmem:[#allocation5 + $0x98] sm:$0xff] }
  0x98   : > { %687 = vmatprep.subr.mxu0 %v587_v47  ;;  %v867_v47 = vld [vmem:[#allocation5 + $0x2a0] sm:$0xff] }
  0x99   : > { %688 = vmatpush1.msra.mxu0 %v586_v48  ;;  %v800_v48 = vld [vmem:[#allocation5 + $0x90] sm:$0xff] }
  0x9a   : > { %689 = vmatprep.subr.mxu0 %v585_v49  ;;  %v866_v49 = vld [vmem:[#allocation5 + $0x298] sm:$0xff] }
  0x9b   : > { %690 = vmatpush1.msra.mxu0 %v584_v50  ;;  %v799_v50 = vld [vmem:[#allocation5 + $0x88] sm:$0xff] }
  0x9c   : > { %691 = vmatprep.subr.mxu0 %v647_v51  ;;  %v865_v51 = vld [vmem:[#allocation5 + $0x290] sm:$0xff] }
  0x9d   : > { %692 = vmatpush2.msra.mxu0 %v646_v52  ;;  %v798_v52 = vld [vmem:[#allocation5 + $0x80] sm:$0xff] }
  0x9e   : > { %693 = vmatprep.subr.mxu0 %v645_v53  ;;  %v864_v53 = vld [vmem:[#allocation5 + $0x288] sm:$0xff] }
  0x9f   : > { %694 = vmatpush2.msra.mxu0 %v644_v54  ;;  %v797_v54 = vld [vmem:[#allocation5 + $0x78] sm:$0xff] }
  0xa0   : > { %695 = vmatprep.subr.mxu0 %v643_v55  ;;  %v863_v55 = vld [vmem:[#allocation5 + $0x280] sm:$0xff] }
  0xa1   : > { %696 = vmatpush2.msra.mxu0 %v642_v57  ;;  %v796_v57 = vld [vmem:[#allocation5 + $0x70] sm:$0xff] }
  0xa2   : > { %697 = vmatprep.subr.mxu0 %v641_v58  ;;  %v862_v58 = vld [vmem:[#allocation5 + $0x278] sm:$0xff] }
  0xa3   : > { %698 = vmatpush2.msra.mxu0 %v640_v59  ;;  %v795_v59 = vld [vmem:[#allocation5 + $0x68] sm:$0xff] }
  0xa4   : > { %699 = vmatprep.subr.mxu0 %v639_v60  ;;  %v861_v60 = vld [vmem:[#allocation5 + $0x270] sm:$0xff] }
  0xa5   : > { %700 = vmatpush2.msra.mxu0 %v638_v61  ;;  %v794_v61 = vld [vmem:[#allocation5 + $0x60] sm:$0xff] }
  0xa6   : > { %701 = vmatprep.subr.mxu0 %v637_v62  ;;  %v860_v62 = vld [vmem:[#allocation5 + $0x268] sm:$0xff] }
  0xa7   : > { %702 = vmatpush2.msra.mxu0 %v636_v63  ;;  %v793_v63 = vld [vmem:[#allocation5 + $0x58] sm:$0xff] }
  0xa8   : > { %703 = vmatprep.subr.mxu0 %v635_v1  ;;  %v859_v1 = vld [vmem:[#allocation5 + $0x260] sm:$0xff] }
  0xa9   : > { %704 = vmatpush2.msra.mxu0 %v634_v2  ;;  %v792_v2 = vld [vmem:[#allocation5 + $0x50] sm:$0xff] }
  0xaa   : > { %705 = vmatprep.subr.mxu0 %v633_v3  ;;  %v858_v3 = vld [vmem:[#allocation5 + $0x258] sm:$0xff] }
  0xab   : > { %706 = vmatpush2.msra.mxu0 %v632_v4  ;;  %v791_v4 = vld [vmem:[#allocation5 + $0x48] sm:$0xff] }
  0xac   : > { %707 = vmatprep.subr.mxu0 %v631_v5  ;;  %v857_v5 = vld [vmem:[#allocation5 + $0x250] sm:$0xff] }
  0xad   : > { %708 = vmatpush2.msra.mxu0 %v630_v7  ;;  %v790_v7 = vld [vmem:[#allocation5 + $0x40] sm:$0xff] }
  0xae   : > { %709 = vmatprep.subr.mxu0 %v629_v8  ;;  %v856_v8 = vld [vmem:[#allocation5 + $0x248] sm:$0xff] }
  0xaf   : > { %710 = vmatpush2.msra.mxu0 %v628_v9  ;;  %v789_v9 = vld [vmem:[#allocation5 + $0x38] sm:$0xff] }
  0xb0   : > { %711 = vmatprep.subr.mxu0 %v627_v11  ;;  %v855_v11 = vld [vmem:[#allocation5 + $0x240] sm:$0xff] }
  0xb1   : > { %712 = vmatpush2.msra.mxu0 %v626_v13  ;;  %v788_v13 = vld [vmem:[#allocation5 + $0x30] sm:$0xff] }
  0xb2   : > { %713 = vmatprep.subr.mxu0 %v625_v14  ;;  %v854_v14 = vld [vmem:[#allocation5 + $0x238] sm:$0xff] }
  0xb3   : > { %714 = vmatpush2.msra.mxu0 %v624_v15  ;;  %v787_v15 = vld [vmem:[#allocation5 + $0x28] sm:$0xff] }
  0xb4   : > { %715 = vmatprep.subr.mxu0 %v623_v17  ;;  %v853_v17 = vld [vmem:[#allocation5 + $0x230] sm:$0xff] }
  0xb5   : > { %716 = vmatpush2.msra.mxu0 %v622_v18  ;;  %v786_v18 = vld [vmem:[#allocation5 + $0x20] sm:$0xff] }
  0xb6   : > { %717 = vmatprep.subr.mxu0 %v621_v19  ;;  %v852_v19 = vld [vmem:[#allocation5 + $0x228] sm:$0xff] }
  0xb7   : > { %718 = vmatpush2.msra.mxu0 %v620_v20  ;;  %v785_v20 = vld [vmem:[#allocation5 + $0x18] sm:$0xff] }
  0xb8   : > { %719 = vmatprep.subr.mxu0 %v619_v21  ;;  %v851_v21 = vld [vmem:[#allocation5 + $0x220] sm:$0xff] }
  0xb9   : > { %720 = vmatpush2.msra.mxu0 %v618_v22  ;;  %v784_v22 = vld [vmem:[#allocation5 + $0x10] sm:$0xff] }
  0xba   : > { %721 = vmatprep.subr.mxu0 %v617_v23  ;;  %v850_v23 = vld [vmem:[#allocation5 + $0x218] sm:$0xff] }
  0xbb   : > { %722 = vmatpush2.msra.mxu0 %v616_v24  ;;  %v783_v24 = vld [vmem:[#allocation5 + $0x8] sm:$0xff] }
  0xbc   : > { %724 = vmatmul.mubr.f32.vlgmr.msra.gmra.mxu0 %v1799_v40  ;;  %994 = vmatprep.subr.mxu0 %v813_v25  ;;  %v875_v40 = vld [vmem:[#allocation5 + $0x2e0] sm:$0xff]  ;;  %v849_v25 = vld [vmem:[#allocation5 + $0x210] sm:$0xff] }
  0xbd   : > { %729 = vmatprep.mubr.f32.mxu0 %v653_v16  ;;  %995 = vmatpush1.msra.mxu0 %v812_v26  ;;  %v874_v16 = vld [vmem:[#allocation5 + $0x2d8] sm:$0xff]  ;;  %v782_v26 = vld [vmem:[#allocation5] sm:$0xff] }
  0xbe   : > { %996 = vmatprep.subr.mxu0 %v811_v27  ;;  %926 = vmatpush1.msra.mxu1 %v875_v40  ;;  %v848_v27 = vld [vmem:[#allocation5 + $0x208] sm:$0xff]  ;;  %v842_v40 = vld [vmem:[#allocation5 + $0x1e0] sm:$0xff] }
  0xbf   : > { %997 = vmatpush1.msra.mxu0 %v810_v28  ;;  %927 = vmatprep.subr.mxu1 %v874_v16  ;;  %v845_v28 = vld [vmem:[#allocation5 + $0x1f8] sm:$0xff] }
  0xc0   : > { %730 = vmatmul.mubr.f32.gmra.mxu0 %v650_v35  ;;  %998 = vmatprep.subr.mxu0 %v809_v30  ;;  %v805_v35 = vld [vmem:[#allocation5 + $0xb8] sm:$0xff]  ;;  %v844_v30 = vld [vmem:[#allocation5 + $0x1f0] sm:$0xff] }
  0xc1   : > { %999 = vmatpush1.msra.mxu0 %v808_v34  ;;  %928 = vmatpush1.msra.mxu1 %v873_v36  ;;  %v909_v34 = vld [vmem:[#allocation5 + $0x3f0] sm:$0xff]  ;;  %v841_v16 = vld [vmem:[#allocation5 + $0x1d8] sm:$0xff]  ;;  %v907_v36 = vld [vmem:[#allocation5 + $0x3e0] sm:$0xff] }
  0xc2   : > { %1000 = vmatprep.subr.mxu0 %v807_v56  ;;  %929 = vmatprep.subr.mxu1 %v872_v31  ;;  %v908_v56 = vld [vmem:[#allocation5 + $0x3e8] sm:$0xff]  ;;  %v906_v31 = vld [vmem:[#allocation5 + $0x3d8] sm:$0xff] }
  0xc3   : > { %1001 = vmatpush1.msra.mxu0 %v806_v37  ;;  %930 = vmatpush1.msra.mxu1 %v871_v38  ;;  %v840_v37 = vld [vmem:[#allocation5 + $0x1d0] sm:$0xff] }
  0xc4   : > { %1002 = vmatprep.subr.mxu0 %v805_v35  ;;  %931 = vmatprep.subr.mxu1 %v870_v41  ;;  %v839_v35 = vld [vmem:[#allocation5 + $0x1c8] sm:$0xff]  ;;  %v905_v38 = vld [vmem:[#allocation5 + $0x3d0] sm:$0xff] }
  0xc5   : > { %1003 = vmatpush1.msra.mxu0 %v804_v39  ;;  %932 = vmatpush1.msra.mxu1 %v869_v43  ;;  %v838_v39 = vld [vmem:[#allocation5 + $0x1c0] sm:$0xff]  ;;  %v904_v41 = vld [vmem:[#allocation5 + $0x3c8] sm:$0xff] }
  0xc6   : > { %1004 = vmatprep.subr.mxu0 %v803_v42  ;;  %933 = vmatprep.subr.mxu1 %v868_v45  ;;  %v837_v42 = vld [vmem:[#allocation5 + $0x1b8] sm:$0xff]  ;;  %v903_v43 = vld [vmem:[#allocation5 + $0x3c0] sm:$0xff] }
  0xc7   : > { %1005 = vmatpush1.msra.mxu0 %v802_v44  ;;  %934 = vmatpush1.msra.mxu1 %v867_v47  ;;  %v836_v44 = vld [vmem:[#allocation5 + $0x1b0] sm:$0xff]  ;;  %v902_v45 = vld [vmem:[#allocation5 + $0x3b8] sm:$0xff] }
  0xc8   : > { %1006 = vmatprep.subr.mxu0 %v801_v46  ;;  %935 = vmatprep.subr.mxu1 %v866_v49  ;;  %v835_v46 = vld [vmem:[#allocation5 + $0x1a8] sm:$0xff]  ;;  %v901_v47 = vld [vmem:[#allocation5 + $0x3b0] sm:$0xff] }
  0xc9   : > { %1007 = vmatpush1.msra.mxu0 %v800_v48  ;;  %936 = vmatpush1.msra.mxu1 %v865_v51  ;;  %v834_v48 = vld [vmem:[#allocation5 + $0x1a0] sm:$0xff]  ;;  %v900_v49 = vld [vmem:[#allocation5 + $0x3a8] sm:$0xff] }
  0xca   : > { %1008 = vmatprep.subr.mxu0 %v799_v50  ;;  %937 = vmatprep.subr.mxu1 %v864_v53  ;;  %v833_v50 = vld [vmem:[#allocation5 + $0x198] sm:$0xff]  ;;  %v899_v51 = vld [vmem:[#allocation5 + $0x3a0] sm:$0xff] }
  0xcb   : > { %1009 = vmatpush1.msra.mxu0 %v798_v52  ;;  %938 = vmatpush1.msra.mxu1 %v863_v55  ;;  %v832_v52 = vld [vmem:[#allocation5 + $0x190] sm:$0xff]  ;;  %v898_v53 = vld [vmem:[#allocation5 + $0x398] sm:$0xff]  ;;  %v830_v55 = vld [vmem:[#allocation5 + $0x180] sm:$0xff] }
  0xcc   : > { %1010 = vmatprep.subr.mxu0 %v797_v54  ;;  %939 = vmatprep.subr.mxu1 %v862_v58  ;;  %v831_v54 = vld [vmem:[#allocation5 + $0x188] sm:$0xff]  ;;  %v828_v58 = vld [vmem:[#allocation5 + $0x170] sm:$0xff] }
  0xcd   : > { %1011 = vmatpush1.msra.mxu0 %v796_v57  ;;  %940 = vmatpush1.msra.mxu1 %v861_v60  ;;  %v829_v57 = vld [vmem:[#allocation5 + $0x178] sm:$0xff]  ;;  %v826_v60 = vld [vmem:[#allocation5 + $0x160] sm:$0xff] }
  0xce   : > { %1012 = vmatprep.subr.mxu0 %v795_v59  ;;  %941 = vmatprep.subr.mxu1 %v860_v62  ;;  %v827_v59 = vld [vmem:[#allocation5 + $0x168] sm:$0xff]  ;;  %v825_v62 = vld [vmem:[#allocation5 + $0x158] sm:$0xff] }
  0xcf   : > { %1013 = vmatpush1.msra.mxu0 %v794_v61  ;;  %942 = vmatpush1.msra.mxu1 %v859_v1  ;;  %v897_v61 = vld [vmem:[#allocation5 + $0x390] sm:$0xff] }
  0xd0   : > { %1014 = vmatprep.subr.mxu0 %v793_v63  ;;  %943 = vmatprep.subr.mxu1 %v858_v3  ;;  %v896_v63 = vld [vmem:[#allocation5 + $0x388] sm:$0xff]  ;;  %v824_v1 = vld [vmem:[#allocation5 + $0x150] sm:$0xff] }
  0xd1   : > { %1015 = vmatpush1.msra.mxu0 %v792_v2  ;;  %944 = vmatpush1.msra.mxu1 %v857_v5  ;;  %v895_v2 = vld [vmem:[#allocation5 + $0x380] sm:$0xff]  ;;  %v823_v3 = vld [vmem:[#allocation5 + $0x148] sm:$0xff] }
  0xd2   : > { %1016 = vmatprep.subr.mxu0 %v791_v4  ;;  %945 = vmatprep.subr.mxu1 %v856_v8  ;;  %v894_v4 = vld [vmem:[#allocation5 + $0x378] sm:$0xff]  ;;  %v822_v5 = vld [vmem:[#allocation5 + $0x140] sm:$0xff] }
  0xd3   : > { %1017 = vmatpush1.msra.mxu0 %v790_v7  ;;  %946 = vmatpush1.msra.mxu1 %v855_v11  ;;  %v893_v7 = vld [vmem:[#allocation5 + $0x370] sm:$0xff]  ;;  %v821_v8 = vld [vmem:[#allocation5 + $0x138] sm:$0xff] }
  0xd4   : > { %1018 = vmatprep.subr.mxu0 %v789_v9  ;;  %947 = vmatprep.subr.mxu1 %v854_v14  ;;  %v892_v9 = vld [vmem:[#allocation5 + $0x368] sm:$0xff]  ;;  %v820_v11 = vld [vmem:[#allocation5 + $0x130] sm:$0xff] }
  0xd5   : > { %1019 = vmatpush1.msra.mxu0 %v788_v13  ;;  %948 = vmatpush1.msra.mxu1 %v853_v17  ;;  %v891_v13 = vld [vmem:[#allocation5 + $0x360] sm:$0xff]  ;;  %v819_v14 = vld [vmem:[#allocation5 + $0x128] sm:$0xff] }
  0xd6   : > { %1020 = vmatprep.subr.mxu0 %v787_v15  ;;  %949 = vmatprep.subr.mxu1 %v852_v19  ;;  %v890_v15 = vld [vmem:[#allocation5 + $0x358] sm:$0xff]  ;;  %v818_v17 = vld [vmem:[#allocation5 + $0x120] sm:$0xff] }
  0xd7   : > { %1021 = vmatpush1.msra.mxu0 %v786_v18  ;;  %950 = vmatpush1.msra.mxu1 %v851_v21  ;;  %v889_v18 = vld [vmem:[#allocation5 + $0x350] sm:$0xff]  ;;  %v817_v19 = vld [vmem:[#allocation5 + $0x118] sm:$0xff] }
  0xd8   : > { %1022 = vmatprep.subr.mxu0 %v785_v20  ;;  %951 = vmatprep.subr.mxu1 %v850_v23  ;;  %v888_v20 = vld [vmem:[#allocation5 + $0x348] sm:$0xff]  ;;  %v816_v21 = vld [vmem:[#allocation5 + $0x110] sm:$0xff] }
  0xd9   : > { %1023 = vmatpush1.msra.mxu0 %v784_v22  ;;  %952 = vmatpush1.msra.mxu1 %v849_v25  ;;  %v887_v22 = vld [vmem:[#allocation5 + $0x340] sm:$0xff]  ;;  %v815_v23 = vld [vmem:[#allocation5 + $0x108] sm:$0xff] }
  0xda   : > { %1024 = vmatprep.subr.mxu0 %v783_v24  ;;  %953 = vmatprep.subr.mxu1 %v848_v27  ;;  %v886_v24 = vld [vmem:[#allocation5 + $0x338] sm:$0xff]  ;;  %v814_v25 = vld [vmem:[#allocation5 + $0x100] sm:$0xff]  ;;  %v884_v27 = vld [vmem:[#allocation5 + $0x328] sm:$0xff] }
  0xdb   : > { %1025 = vmatpush1.msra.mxu0 %v782_v26  ;;  %954 = vmatpush1.msra.mxu1 %v847_v29  ;;  %v885_v26 = vld [vmem:[#allocation5 + $0x330] sm:$0xff]  ;;  %v882_v29 = vld [vmem:[#allocation5 + $0x318] sm:$0xff] }
  0xdc   : > { %1026 = vmatprep.subr.mxu0 %v845_v28  ;;  %955 = vmatprep.subr.mxu1 %v910_v32  ;;  %v883_v28 = vld [vmem:[#allocation5 + $0x320] sm:$0xff]  ;;  %v880_v32 = vld [vmem:[#allocation5 + $0x308] sm:$0xff] }
  0xdd   : > { %1027 = vmatpush2.msra.mxu0 %v844_v30  ;;  %956 = vmatpush2.msra.mxu1 %v909_v34  ;;  %v881_v30 = vld [vmem:[#allocation5 + $0x310] sm:$0xff]  ;;  %v1097_v34 = vld [vmem:[#allocation5 + $0x4f8] sm:$0xff] }
  0xde   : > { %1028 = vmatprep.subr.mxu0 %v843_v33  ;;  %957 = vmatprep.subr.mxu1 %v908_v56  ;;  %v879_v33 = vld [vmem:[#allocation5 + $0x300] sm:$0xff] }
  0xdf   : > { %1029 = vmatpush2.msra.mxu0 %v842_v40  ;;  %958 = vmatpush2.msra.mxu1 %v907_v36  ;;  %v742_v40 = vlaneseq }
  0xe0   : > { %1030 = vmatprep.subr.mxu0 %v841_v16  ;;  %959 = vmatprep.subr.mxu1 %v906_v31 }
  0xe1   : > { %1031 = vmatpush2.msra.mxu0 %v840_v37  ;;  %960 = vmatpush2.msra.mxu1 %v905_v38  ;;  %v1836_v16 = vshrl.u32 %v742_v40, 7  ;;  %v1091_v40 = vld [vmem:[#allocation5 + $0x4c8] sm:$0xff] }
  0xe2   : > { %1032 = vmatprep.subr.mxu0 %v839_v35  ;;  %961 = vmatprep.subr.mxu1 %v904_v41 }
  0xe3   : > { %1033 = vmatpush2.msra.mxu0 %v838_v39  ;;  %962 = vmatpush2.msra.mxu1 %v903_v43  ;;  %v744_v35 = vsub.s32 0, %v1836_v16  ;;  %v740_v39 = vld [vmem:[%s1916_s2] sm:$0x3]  ;;  %v748_v41 = vsub.s32 1, %v1836_v16 }
  0xe4   : > { %1034 = vmatprep.subr.mxu0 %v837_v42  ;;  %963 = vmatprep.subr.mxu1 %v902_v45  ;;  %v769_v42 = vstv %s1362_s10  ;;  %v768_v45 = vadd.s32 8, %v1836_v16  ;;  %s1242_s10 = scalar_lea.hbm %s1919_s5, %s1368_s30 }
  0xe5   : > { %1035 = vmatpush2.msra.mxu0 %v836_v44  ;;  %964 = vmatpush2.msra.mxu1 %v901_v47  ;;  %v745_v47 = vrot.slane %v740_v39, %v744_v35 }
  0xe6   : > { %1036 = vmatprep.subr.mxu0 %v835_v46  ;;  %965 = vmatprep.subr.mxu1 %v900_v49  ;;  %v770_v49 = vadd.s32 %v769_v42, %v1836_v16 }
  0xe7   : > { %1037 = vmatpush2.msra.mxu0 %v834_v48  ;;  %966 = vmatpush2.msra.mxu1 %v899_v51 }
  0xe8   : > { %1038 = vmatprep.subr.mxu0 %v833_v50  ;;  %967 = vmatprep.subr.mxu1 %v898_v53  ;;  %vm772_vm2 = vcmp.ge.s32.totalorder %v770_v49, 0  ;;  %vm774_vm3 = vcmp.lt.s32.totalorder %v770_v49, 16  ;;  %v1077_v49 = vld [vmem:[#allocation5 + $0x458] sm:$0xff] }
  0xe9   : > { %1039 = vmatpush2.msra.mxu0 %v832_v52  ;;  %968 = vmatpush2.msra.mxu1 %v897_v61  ;;  %v749_v52 = vrot.slane %v740_v39, %v748_v41  ;;  %vm776_vm6 = vmand %vm772_vm2, %vm774_vm3  ;;  %v1085_v39 = vld [vmem:[#allocation5 + $0x498] sm:$0xff] }
  0xea   : > { %1040 = vmatprep.subr.mxu0 %v831_v54  ;;  %969 = vmatprep.subr.mxu1 %v896_v63 }
  0xeb   : > { %1041 = vmatpush2.msra.mxu0 %v830_v55  ;;  %970 = vmatpush2.msra.mxu1 %v895_v2  ;;  %v771_v55 = vadd.s32 %v769_v42, %v768_v45  ;;  %v1084_v42 = vld [vmem:[#allocation5 + $0x490] sm:$0xff]  ;;  %v1081_v45 = vld [vmem:[#allocation5 + $0x478] sm:$0xff] }
  0xec   : > { %1042 = vmatprep.subr.mxu0 %v829_v57  ;;  %971 = vmatprep.subr.mxu1 %v894_v4 }
  0xed   : > { %1043 = vmatpush2.msra.mxu0 %v828_v58  ;;  %972 = vmatpush2.msra.mxu1 %v893_v7  ;;  %vm773_vm4 = vcmp.ge.s32.totalorder %v771_v55, 0  ;;  %vm775_vm5 = vcmp.lt.s32.totalorder %v771_v55, 16  ;;  %v1071_v55 = vld [vmem:[#allocation5 + $0x428] sm:$0xff] }
  0xee   : > { %1044 = vmatprep.subr.mxu0 %v827_v59  ;;  %973 = vmatprep.subr.mxu1 %v892_v9  ;;  %vm777_vm7 = vmand %vm773_vm4, %vm775_vm5 }
  0xef   : > { %1045 = vmatpush2.msra.mxu0 %v826_v60  ;;  %974 = vmatpush2.msra.mxu1 %v891_v13 }
  0xf0   : > { %1046 = vmatprep.subr.mxu0 %v825_v62  ;;  %975 = vmatprep.subr.mxu1 %v890_v15 }
  0xf1   : > { %1047 = vmatpush2.msra.mxu0 %v824_v1  ;;  %976 = vmatpush2.msra.mxu1 %v889_v18 }
  0xf2   : > { %1048 = vmatprep.subr.mxu0 %v823_v3  ;;  %977 = vmatprep.subr.mxu1 %v888_v20 }
  0xf3   : > { %1049 = vmatpush2.msra.mxu0 %v822_v5  ;;  %978 = vmatpush2.msra.mxu1 %v887_v22 }
  0xf4   : > { %1050 = vmatprep.subr.mxu0 %v821_v8  ;;  %979 = vmatprep.subr.mxu1 %v886_v24 }
  0xf5   : > { %1051 = vmatpush2.msra.mxu0 %v820_v11  ;;  %980 = vmatpush2.msra.mxu1 %v885_v26 }
  0xf6   : > { %1052 = vmatprep.subr.mxu0 %v819_v14  ;;  %981 = vmatprep.subr.mxu1 %v884_v27  ;;  %v1096_v27 = vld [vmem:[#allocation5 + $0x4f0] sm:$0xff] }
  0xf7   : > { %1053 = vmatpush2.msra.mxu0 %v818_v17  ;;  %982 = vmatpush2.msra.mxu1 %v883_v28 }
  0xf8   : > { %1054 = vmatprep.subr.mxu0 %v817_v19  ;;  %983 = vmatprep.subr.mxu1 %v882_v29 }
  0xf9   : > { %1055 = vmatpush2.msra.mxu0 %v816_v21  ;;  %984 = vmatpush2.msra.mxu1 %v881_v30 }
  0xfa   : > { %1056 = vmatprep.subr.mxu0 %v815_v23  ;;  %985 = vmatprep.subr.mxu1 %v880_v32  ;;  %v1094_v32 = vld [vmem:[#allocation5 + $0x4e0] sm:$0xff] }
  0xfb   : > { %1057 = vmatpush2.msra.mxu0 %v814_v25  ;;  %986 = vmatpush2.msra.mxu1 %v879_v33  ;;  %v1093_v33 = vld [vmem:[#allocation5 + $0x4d8] sm:$0xff] }
  0xfc   : > { %1138 = vmatprep.subr.mxu1 %v1097_v34  ;;  %v1092_v34 = vld [vmem:[#allocation5 + $0x4d0] sm:$0xff] }
 0x13a   : > { %v495_v56 = vpop.f32.mrf.mxu0 }
 0x13b   : > { %v572_v36 = vpop.f32.mrf.mxu1 }
 0x13c   : > { %v497_v37 = vpop.f32.mrf.mxu0  ;;  %v573_v46 = vadd.f32 %v572_v36, %v495_v56  ;;  %v1090_v56 = vld [vmem:[#allocation5 + $0x4c0] sm:$0xff]  ;;  %v1089_v36 = vld [vmem:[#allocation5 + $0x4b8] sm:$0xff] }
 0x13d   : > { %v574_v38 = vpop.f32.mrf.mxu1 }
 0x13e   : > { %v575_v50 = vadd.f32 %v574_v38, %v497_v37  ;;  %v1088_v37 = vld [vmem:[#allocation5 + $0x4b0] sm:$0xff]  ;;  %v1086_v38 = vld [vmem:[#allocation5 + $0x4a0] sm:$0xff] }
 0x13f   : > { %v578_v43 = vpop.f32.mrf.mxu1 }
 0x140   : > { %v501_v31 = vpop.f32.mrf.mxu0 }
 0x141   : > { %v580_v53 = vpop.f32.mrf.mxu1  ;;  %v579_v57 = vadd.f32 %v578_v43, %v501_v31  ;;  %v1087_v31 = vld [vmem:[#allocation5 + $0x4a8] sm:$0xff] }
 0x142   : > { %v503_v44 = vpop.f32.mrf.mxu0  ;;  %v1083_v43 = vld [vmem:[#allocation5 + $0x488] sm:$0xff] }
 0x143   : > { %v581_v61 = vadd.f32 %v580_v53, %v503_v44  ;;  %v1082_v44 = vld [vmem:[#allocation5 + $0x480] sm:$0xff]  ;;  %v1073_v53 = vld [vmem:[#allocation5 + $0x438] sm:$0xff] }
 0x17c   : > { %v725_v48 = vpop.f32.mrf.mxu0 }
 0x17d   : > { %v736_v51 = vadd.f32 %v725_v48, %v573_v46  ;;  %v1080_v46 = vld [vmem:[#allocation5 + $0x470] sm:$0xff]  ;;  %v1078_v48 = vld [vmem:[#allocation5 + $0x460] sm:$0xff] }
 0x17e   : > { %v727_v54 = vpop.f32.mrf.mxu0 }
 0x17f   : > { %v752_v58 = vadd.f32 %v745_v47, %v736_v51  ;;  %v737_v59 = vadd.f32 %v727_v54, %v575_v50  ;;  %v1076_v50 = vld [vmem:[#allocation5 + $0x450] sm:$0xff]  ;;  %v1075_v51 = vld [vmem:[#allocation5 + $0x448] sm:$0xff] }
 0x180   : > { %v731_v60 = vpop.f32.mrf.mxu0  ;;  %v1072_v54 = vld [vmem:[#allocation5 + $0x430] sm:$0xff] }
 0x181   : > { %v756_v62 = vmax.f32 %v752_v58, 0.0  ;;  %v753_v63 = vadd.f32 %v749_v52, %v737_v59  ;;  %v738_v1 = vadd.f32 %v731_v60, %v579_v57  ;;  %v1070_v57 = vld [vmem:[#allocation5 + $0x420] sm:$0xff]  ;;  %v1069_v58 = vld [vmem:[#allocation5 + $0x418] sm:$0xff]  ;;  %v1068_v59 = vld [vmem:[#allocation5 + $0x410] sm:$0xff] }
 0x182   : > { %v733_v2 = vpop.f32.mrf.mxu0  ;;  %v1067_v60 = vld [vmem:[#allocation5 + $0x408] sm:$0xff] }
 0x183   : > { %v760_v3 = vadd.f32 %v756_v62, %v1818_v12  ;;  %v757_v4 = vmax.f32 %v753_v63, 0.0  ;;  %v754_v5 = vadd.f32 %v745_v47, %v738_v1  ;;  %v739_v7 = vadd.f32 %v733_v2, %v581_v61  ;;  %v1079_v47 = vld [vmem:[#allocation5 + $0x468] sm:$0xff]  ;;  %v1066_v61 = vld [vmem:[#allocation5 + $0x400] sm:$0xff]  ;;  %v1129_v62 = vld [vmem:[#allocation5 + $0x5f8] sm:$0xff] }
 0x184   : > { %v1128_v63 = vld [vmem:[#allocation5 + $0x5f0] sm:$0xff]  ;;  %v1127_v1 = vld [vmem:[#allocation5 + $0x5e8] sm:$0xff]  ;;  %v1126_v2 = vld [vmem:[#allocation5 + $0x5e0] sm:$0xff] }
 0x185   : > { %v761_v8 = vadd.f32 %v757_v4, %v1814_v10  ;;  %v758_v9 = vmax.f32 %v754_v5, 0.0  ;;  %v755_v11 = vadd.f32 %v749_v52, %v739_v7  ;;  %v778_v15 = vsel %vm776_vm6, %v760_v3, 0.0  ;;  %v1074_v52 = vld [vmem:[#allocation5 + $0x440] sm:$0xff]  ;;  %v1124_v4 = vld [vmem:[#allocation5 + $0x5d0] sm:$0xff]  ;;  %v1123_v5 = vld [vmem:[#allocation5 + $0x5c8] sm:$0xff] }
 0x186   : > { %v1130_v12 = vrot.slane %v778_v15, 2  ;;  %v915_v26 = vrot.slane %v778_v15, 1  ;;  %v1122_v7 = vld [vmem:[#allocation5 + $0x5c0] sm:$0xff]  ;;  %v1116_v15 = vld [vmem:[#allocation5 + $0x590] sm:$0xff] }
 0x187   : > { %v762_v13 = vadd.f32 %v758_v9, %v1810_v6  ;;  %v759_v14 = vmax.f32 %v755_v11, 0.0  ;;  %1363 = vmatprep.mubr.msk.f32.mxu0 %vm776_vm6, %v761_v8  ;;  %v779_v19 = vsel %vm776_vm6, %v761_v8, 0.0  ;;  %v1121_v8 = vld [vmem:[#allocation5 + $0x5b8] sm:$0xff]  ;;  %v1120_v9 = vld [vmem:[#allocation5 + $0x5b0] sm:$0xff]  ;;  %v1119_v11 = vld [vmem:[#allocation5 + $0x5a8] sm:$0xff] }
 0x188   : > { %1364 = vmatmul.mubr.msk.f32.vlgmr.msra.gmra.mxu0 %vm776_vm6, %v760_v3  ;;  %v918_v23 = vrot.slane %v779_v19, 1  ;;  %v1133_v28 = vrot.slane %v779_v19, 2  ;;  %v1125_v3 = vld [vmem:[#allocation5 + $0x5d8] sm:$0xff] }
 0x189   : > { %v780_v17 = vsel %vm777_vm7, %v762_v13, 0.0  ;;  %v763_v18 = vadd.f32 %v759_v14, %v1806_v0  ;;  %v1095_v0 = vld [vmem:[#allocation5 + $0x4e8] sm:$0xff]  ;;  %v1118_v13 = vld [vmem:[#allocation5 + $0x5a0] sm:$0xff]  ;;  %v1117_v14 = vld [vmem:[#allocation5 + $0x598] sm:$0xff] }
 0x18a   : > { %v1131_v20 = vrot.slane %v780_v17, 2  ;;  %v916_v21 = vrot.slane %v780_v17, 1  ;;  %v1115_v17 = vld [vmem:[#allocation5 + $0x588] sm:$0xff]  ;;  %v1113_v19 = vld [vmem:[#allocation5 + $0x578] sm:$0xff] }
 0x18b   : > { %v781_v22 = vsel %vm777_vm7, %v763_v18, 0.0  ;;  %v1114_v18 = vld [vmem:[#allocation5 + $0x580] sm:$0xff] }
 0x18c   : > { %v919_v24 = vrot.slane %v781_v22, 1  ;;  %v1134_v10 = vrot.slane %v781_v22, 2  ;;  %v1855_v25 = vsel %vm648_vm0, %v1130_v12, %v1131_v20  ;;  %v917_v29 = vsel %vm418_vm1, %v915_v26, %v916_v21  ;;  %v1112_v12 = vld [vmem:[#allocation5 + $0x570] sm:$0xff]  ;;  %v1111_v20 = vld [vmem:[#allocation5 + $0x568] sm:$0xff]  ;;  %v1110_v21 = vld [vmem:[#allocation5 + $0x560] sm:$0xff] }
 0x18d   : > { %v1109_v22 = vld [vmem:[#allocation5 + $0x558] sm:$0xff] }
 0x18e   : > { %v920_v6 = vsel %vm418_vm1, %v918_v23, %v919_v24  ;;  %v1135_v30 = vsel %vm648_vm0, %v1133_v28, %v1134_v10  ;;  %v1108_v23 = vld [vmem:[#allocation5 + $0x550] sm:$0xff]  ;;  %v1107_v24 = vld [vmem:[#allocation5 + $0x548] sm:$0xff]  ;;  %v1106_v10 = vld [vmem:[#allocation5 + $0x540] sm:$0xff] }
 0x18f   : > { %987 = vmatprep.mubr.f32.mxu1 %v920_v6  ;;  %v1105_v26 = vld [vmem:[#allocation5 + $0x538] sm:$0xff]  ;;  %v1104_v6 = vld [vmem:[#allocation5 + $0x530] sm:$0xff]  ;;  %v1102_v28 = vld [vmem:[#allocation5 + $0x520] sm:$0xff] }
 0x190   : > { %988 = vmatmul.mubr.f32.vlgmr.msra.gmra.mxu1 %v917_v29  ;;  %v1101_v29 = vld [vmem:[#allocation5 + $0x518] sm:$0xff] }
 0x191   : > { %1139 = vmatpush1.msra.mxu1 %v1096_v27  ;;  %1202 = vmatprep.mubr.f32.mxu1 %v1135_v30  ;;  %v1103_v27 = vld [vmem:[#allocation5 + $0x528] sm:$0xff] }
 0x192   : > { %1140 = vmatprep.subr.mxu1 %v1095_v0  ;;  %v1100_v0 = vld [vmem:[#allocation5 + $0x510] sm:$0xff]  ;;  %v1099_v30 = vld [vmem:[#allocation5 + $0x508] sm:$0xff] }
 0x193   : > { %1141 = vmatpush1.msra.mxu1 %v1094_v32  ;;  %v1098_v32 = vld [vmem:[#allocation5 + $0x500] sm:$0xff] }
 0x194   : > { %1142 = vmatprep.subr.mxu1 %v1093_v33 }
 0x195   : > { %1143 = vmatpush1.msra.mxu1 %v1092_v34 }
 0x196   : > { %1144 = vmatprep.subr.mxu1 %v1091_v40  ;;  %v1211_v40 = vld [vmem:[%s1918_s4] sm:$0x3] }
 0x197   : > { %1145 = vmatpush1.msra.mxu1 %v1090_v56 }
 0x198   : > { %1146 = vmatprep.subr.mxu1 %v1089_v36 }
 0x199   : > { %1147 = vmatpush1.msra.mxu1 %v1088_v37  ;;  %v1216_v37 = vrot.slane %v1211_v40, %v744_v35 }
 0x19a   : > { %1148 = vmatprep.subr.mxu1 %v1087_v31 }
 0x19b   : > { %1149 = vmatpush1.msra.mxu1 %v1086_v38 }
 0x19c   : > { %1150 = vmatprep.subr.mxu1 %v1085_v39 }
 0x19d   : > { %1151 = vmatpush1.msra.mxu1 %v1084_v42  ;;  %v1220_v42 = vrot.slane %v1211_v40, %v748_v41 }
 0x19e   : > { %1152 = vmatprep.subr.mxu1 %v1083_v43 }
 0x19f   : > { %1153 = vmatpush1.msra.mxu1 %v1082_v44 }
 0x1a0   : > { %1154 = vmatprep.subr.mxu1 %v1081_v45 }
 0x1a1   : > { %1155 = vmatpush1.msra.mxu1 %v1080_v46 }
 0x1a2   : > { %1156 = vmatprep.subr.mxu1 %v1079_v47 }
 0x1a3   : > { %1157 = vmatpush1.msra.mxu1 %v1078_v48 }
 0x1a4   : > { %1158 = vmatprep.subr.mxu1 %v1077_v49 }
 0x1a5   : > { %1159 = vmatpush1.msra.mxu1 %v1076_v50 }
 0x1a6   : > { %1160 = vmatprep.subr.mxu1 %v1075_v51 }
 0x1a7   : > { %1161 = vmatpush1.msra.mxu1 %v1074_v52 }
 0x1a8   : > { %1162 = vmatprep.subr.mxu1 %v1073_v53 }
 0x1a9   : > { %1163 = vmatpush1.msra.mxu1 %v1072_v54 }
 0x1aa   : > { %1164 = vmatprep.subr.mxu1 %v1071_v55 }
 0x1ab   : > { %1165 = vmatpush1.msra.mxu1 %v1070_v57 }
 0x1ac   : > { %1166 = vmatprep.subr.mxu1 %v1069_v58 }
 0x1ad   : > { %1167 = vmatpush1.msra.mxu1 %v1068_v59 }
 0x1ae   : > { %1168 = vmatprep.subr.mxu1 %v1067_v60 }
 0x1af   : > { %1169 = vmatpush1.msra.mxu1 %v1066_v61 }
 0x1b0   : > { %1170 = vmatprep.subr.mxu1 %v1129_v62 }
 0x1b1   : > { %1171 = vmatpush2.msra.mxu1 %v1128_v63 }
 0x1b2   : > { %1172 = vmatprep.subr.mxu1 %v1127_v1 }
 0x1b3   : > { %1173 = vmatpush2.msra.mxu1 %v1126_v2 }
 0x1b4   : > { %1174 = vmatprep.subr.mxu1 %v1125_v3 }
 0x1b5   : > { %1175 = vmatpush2.msra.mxu1 %v1124_v4 }
 0x1b6   : > { %1176 = vmatprep.subr.mxu1 %v1123_v5 }
 0x1b7   : > { %1177 = vmatpush2.msra.mxu1 %v1122_v7 }
 0x1b8   : > { %1178 = vmatprep.subr.mxu1 %v1121_v8 }
 0x1b9   : > { %1179 = vmatpush2.msra.mxu1 %v1120_v9 }
 0x1ba   : > { %1180 = vmatprep.subr.mxu1 %v1119_v11 }
 0x1bb   : > { %1181 = vmatpush2.msra.mxu1 %v1118_v13 }
 0x1bc   : > { %1182 = vmatprep.subr.mxu1 %v1117_v14 }
 0x1bd   : > { %1183 = vmatpush2.msra.mxu1 %v1116_v15 }
 0x1be   : > { %1184 = vmatprep.subr.mxu1 %v1115_v17 }
 0x1bf   : > { %1185 = vmatpush2.msra.mxu1 %v1114_v18 }
 0x1c0   : > { %1186 = vmatprep.subr.mxu1 %v1113_v19 }
 0x1c1   : > { %1187 = vmatpush2.msra.mxu1 %v1112_v12 }
 0x1c2   : > { %1188 = vmatprep.subr.mxu1 %v1111_v20 }
 0x1c3   : > { %1189 = vmatpush2.msra.mxu1 %v1110_v21 }
 0x1c4   : > { %1190 = vmatprep.subr.mxu1 %v1109_v22 }
 0x1c5   : > { %1191 = vmatpush2.msra.mxu1 %v1108_v23 }
 0x1c6   : > { %1192 = vmatprep.subr.mxu1 %v1107_v24 }
 0x1c7   : > { %1193 = vmatpush2.msra.mxu1 %v1106_v10 }
 0x1c8   : > { %1194 = vmatprep.subr.mxu1 %v1105_v26 }
 0x1c9   : > { %1195 = vmatpush2.msra.mxu1 %v1104_v6 }
 0x1ca   : > { %1196 = vmatprep.subr.mxu1 %v1103_v27 }
 0x1cb   : > { %1197 = vmatpush2.msra.mxu1 %v1102_v28 }
 0x1cc   : > { %1198 = vmatprep.subr.mxu1 %v1101_v29 }
 0x1cd   : > { %1199 = vmatpush2.msra.mxu1 %v1100_v0 }
 0x1ce   : > { %1200 = vmatprep.subr.mxu1 %v1099_v30 }
 0x1cf   : > { %1201 = vmatpush2.msra.mxu1 %v1098_v32 }
 0x1d0   : > { %1203 = vmatmul.mubr.f32.vlgmr.msra.gmra.mxu1 %v1855_v25 }
 0x248   : > { %v1060_v34 = vpop.f32.mrf.mxu0 }
 0x24a   : > { %v1062_v31 = vpop.f32.mrf.mxu0 }
 0x250   : > { %v989_v33 = vpop.f32.mrf.mxu1 }
 0x251   : > { %v1061_v36 = vadd.f32 %v1060_v34, %v989_v33 }
 0x252   : > { %v991_v56 = vpop.f32.mrf.mxu1 }
 0x253   : > { %v1063_v39 = vadd.f32 %v1062_v31, %v991_v56 }
 0x290   : > { %v1204_v38 = vpop.f32.mrf.mxu1 }
 0x291   : > { %v1209_v25 = vadd.f32 %v1204_v38, %v1061_v36 }
 0x292   : > { %v1206_v43 = vpop.f32.mrf.mxu1 }
 0x293   : > { %v1223_v44 = vadd.f32 %v1216_v37, %v1209_v25  ;;  %v1210_v45 = vadd.f32 %v1206_v43, %v1063_v39 }
 0x295   : > { %1225 = vst [vmem:[%s271_s6] sm:$0xff] %v1223_v44  ;;  %v1224_v46 = vadd.f32 %v1220_v42, %v1210_v45 }
 0x297   : > { %1226 = vst [vmem:[%s271_s6 + $0x8] sm:$0xff] %v1224_v46 }
 0x298   : > { %1530 = shalt.err (!%p1527_p5)
}
 0x299   : > { %s1531_s16 = scalar_lea.hbm %s1242_s10, 256  ;;  %s1535_s27 = scalar_lea.hbm %s1919_s5, 1024 }
 0x29a   : > { %p1532_p6 = scmp.ne.s32.totalorder %s1242_s10, %s1531_s16  ;;  %p1536_p10 = scmp.lt.s32.totalorder %s1242_s10, %s1919_s5 }
 0x29b   : > { %p1537_p12 = scmp.lt.s32.totalorder %s1535_s27, %s1531_s16 }
 0x29c   : > { %p1533_p7 = pnand %p1532_p6, %p1706_p3 }
 0x29d   : > { %p1538_p0 = por %p1537_p12, %p1536_p10 }
 0x29e   : > { %p1534_p9 = pneg %p1533_p7 }
 0x2a0   : > { %p1539_p1 = pnand %p1538_p0, %p1534_p9 }
 0x2a2   : > { %1542 = shalt.err (!%p1539_p1)
}
 0x2a3   : > { %1379 = dma.vmem_to_hbm [thread:$0]  (%p1706_p3), %s1245_s9, 256, %s1242_s10, %s1228_s14  }
 0x2a4 PF: > { %p1396_p11 = scmp.ge.s32.totalorder %s1617_s25, 2  ;;  %s1256_s21 = sand.u32 1, %s1589_s18  }
 0x2a5   : > { %s1257_s22 = scalar_lea.sflag [#allocation4], %s1256_s21 }
 0x2a6   : > { %p1389_p13 = pnand %p1396_p11, %p1715_p8 }
 0x2a8   : > { %p1390_p2 = pneg %p1389_p13 }
 0x2aa   : > { %1584 = dma.done.wait (%p1390_p2), %s1257_s22, 256  }
 0x2ab   : > { %1586 = vsyncadd (%p1390_p2), %s1257_s22, 4294967040  ;;  %s20_s25 = sadd.s32 1, %s1617_s25   ;;  %s1927_s7 = sld [smem:[#allocation11_spill]] }
 0x2ac   : > { %p17_p4 = scmp.ge.s32.totalorder %s20_s25, 6   ;;  %s1928_s18 = smov %s1593_s19 }
 0x2ad   : > { %s1929_s19 = smov %s1597_s20  ;;  %s1930_s20 = smov %s1733_s13 }
 0x2ae   : > { %s1931_s21 = smov %s1609_s23  ;;  %s1932_s22 = smov %s1613_s24 }
 0x2af   : > { %s1933_s23 = smov %s1936_s28  ;;  %19 = sbr.rel (!%p17_p4) target bundleno = 7 (0x7), region = 88 }
 0x2b1   : > { %s1934_s24 = smov %s1927_s7 }
 0x2b4   :  { %1262 = vsyncpa [#allocation3], 1 }
 0x2b5   :  { %1264 = vsyncpa [#allocation3 + $0x1], 1 }
 0x2b6   :  { %1265 = vsyncpa [#allocation6], 1 }
 0x2b7   :  { %1266 = vsyncpa [#allocation4], 1 }
 0x2b8   :  { %1268 = vsyncpa [#allocation4 + $0x1], 1 }

</bundles_post_ra>
